<compile_context>
chip_gen: v7x
topology: tpu7x:2x2x1
jax: 0.10.0
libtpu: 0.0.40
codegen_flags: <defaults>
</compile_context>

<pallas_src>
import math

import jax
import jax.numpy as jnp
from jax.experimental import pallas as pl
from jax.experimental.pallas import tpu as pltpu

# ----- model config (mirrors the PyTorch module) -----
EMBEDDING_DIM = 100
E_PAD = 128              # embedding dim padded to the 128-lane axis
VOCAB_LEN = 50           # synthetic small vocab (len(itos) in the original)
V_PAD = 128              # vocab padded for a lane-dense logits store
PAD = 0
HIDDEN_SIZE = 32
LATENT_SIZE = 16
KAPPA = 10.0

H = HIDDEN_SIZE
H2 = 2 * HIDDEN_SIZE                     # decoder hidden size (64)
MID = (LATENT_SIZE + 2 * HIDDEN_SIZE) // 2   # context2mu hidden (40)
G_ENC = 4 * HIDDEN_SIZE                  # encoder gate width (128)
G_DEC = 4 * H2                           # decoder gate width (256)
SLAB_W = 256                             # lane width of both parameter slabs

# ----- bf16 parameter-slab row offsets (all multiples of 16) -----
BF_WIH_FB = 0            # (E_PAD, 2*G_ENC) merged fwd|bwd encoder W_ih
BF_DEC_WX = 128          # (E_PAD, G_DEC)   decoder W_ih, embedding part
BF_DEC_WHH = 256         # (H2,   G_DEC)    decoder W_hh
BF_ENC_WHH = 320         # (H,    G_ENC)    encoder fwd W_hh
BF_OUT_W = 352           # (H2,   V_PAD)    output2vocab weight
BF_ROWS = 416

# ----- f32 parameter-slab row offsets (all multiples of 8) -----
F_B_FB = 0               # (1, 2*G_ENC)  encoder fwd|bwd combined biases
F_DEC_B = 8              # (1, G_DEC)    decoder combined bias
F_DEC_WZ = 16            # (L, G_DEC)    decoder W_ih, latent part
F_OUT_B = 32             # (1, V_PAD)    output2vocab bias
F_MU_W1 = 40             # (H2, MID)
F_MU_B1 = 104            # (1, MID)
F_MU_W2 = 112            # (MID, L)
F_MU_B2 = 152            # (1, L)
F_ROWS = 160


def _detect_batch_blocks():
    # v7x has two TensorCores per chip: split the batch across them.  On
    # v5e/v6e (single TC) a batch grid only adds per-step overhead, so use 1.
    try:
        kind = jax.devices()[0].device_kind.lower()
    except Exception:
        return 1
    return 2 if "v7" in kind else 1


NUM_BATCH_BLOCKS = _detect_batch_blocks()


# ---------------------------------------------------------------------------
# Fused Pallas kernel (encoder -> context2mu -> decoder -> vocab head)
# ---------------------------------------------------------------------------
def make_fused_kernel(Bb, Te, Td):
    f32, bf16 = jnp.float32, jnp.bfloat16
    L = LATENT_SIZE

    def gate_acts(tg, hd):
        # i/f/o gate columns were pre-scaled by 0.5 at pack time, so
        # sigmoid(pre) == 0.5*tanh(0.5*pre)+0.5 == 0.5*tg+0.5 (VALU fix-up);
        # g columns are unscaled, so tg already holds tanh(pre_g).
        i = 0.5 * tg[:, 0 * hd:1 * hd] + 0.5
        f = 0.5 * tg[:, 1 * hd:2 * hd] + 0.5
        g = tg[:, 2 * hd:3 * hd]
        o = 0.5 * tg[:, 3 * hd:4 * hd] + 0.5
        return i, f, g, o

    def kernel(x1_ref, x2_ref, fp_ref, bp_ref, out_ref):
        # ---------------- static views into the two packed slabs ----------------
        wih_fb = bp_ref[BF_WIH_FB:BF_WIH_FB + E_PAD, :]          # (128,256) bf16
        dec_wx = bp_ref[BF_DEC_WX:BF_DEC_WX + E_PAD, :]          # (128,256) bf16
        dec_whh = bp_ref[BF_DEC_WHH:BF_DEC_WHH + H2, :]          # (64,256)  bf16
        enc_whh = bp_ref[BF_ENC_WHH:BF_ENC_WHH + H, 0:G_ENC]     # (32,128)  bf16
        out_w = bp_ref[BF_OUT_W:BF_OUT_W + H2, 0:V_PAD]          # (64,128)  bf16

        b_fb = fp_ref[F_B_FB:F_B_FB + 1, :]                      # (1,256)
        dec_b = fp_ref[F_DEC_B:F_DEC_B + 1, :]                   # (1,256)
        dec_wz = fp_ref[F_DEC_WZ:F_DEC_WZ + L, :]                # (16,256)
        out_b = fp_ref[F_OUT_B:F_OUT_B + 1, 0:V_PAD]             # (1,128)
        mu_w1 = fp_ref[F_MU_W1:F_MU_W1 + H2, 0:MID]              # (64,40)
        mu_b1 = fp_ref[F_MU_B1:F_MU_B1 + 1, 0:MID]               # (1,40)
        mu_w2 = fp_ref[F_MU_W2:F_MU_W2 + MID, 0:L]               # (40,16)
        mu_b2 = fp_ref[F_MU_B2:F_MU_B2 + 1, 0:L]                 # (1,16)

        # -------- encoder: fwd|bwd input projections fused in ONE tall matmul --------
        x1 = x1_ref[0]                                           # (Te*Bb, 128), time-major
        enc_pre = jnp.dot(x1.astype(bf16), wih_fb,
                          preferred_element_type=f32) + b_fb      # (Te*Bb, 256)
        enc_pre_f = enc_pre[:, 0:G_ENC]                           # forward-direction gates

        h = jnp.zeros((Bb, H), f32)
        c = jnp.zeros((Bb, H), f32)
        for t in range(Te):                                       # static -> fully unrolled
            gates = enc_pre_f[t * Bb:(t + 1) * Bb, :] + jnp.dot(
                h.astype(bf16), enc_whh, preferred_element_type=f32)
            i, f, g, o = gate_acts(jnp.tanh(gates), H)            # 1 EUP push on the gates
            c = f * c + i * g
            h = o * jnp.tanh(c)
        h_fwd = h

        # Backward direction at t = Te-1 is exactly one step from the zero state
        # (reference reads states[:, -1, H:]); h @ W_hh_rev == 0 and f*c0 == 0.
        gb = jnp.tanh(enc_pre[(Te - 1) * Bb:Te * Bb, G_ENC:2 * G_ENC])
        cb = (0.5 * gb[:, 0:H] + 0.5) * gb[:, 2 * H:3 * H]        # i * g
        h_bwd = (0.5 * gb[:, 3 * H:4 * H] + 0.5) * jnp.tanh(cb)   # o * tanh(c)

        ctx = jnp.concatenate([h_fwd, h_bwd], axis=-1)            # (Bb, 2H)

        # ---------------- context2mu + eps-guarded L2 normalize ----------------
        hmid = jnp.maximum(
            jnp.dot(ctx, mu_w1, preferred_element_type=f32) + mu_b1, 0.0)
        mu = jnp.dot(hmid, mu_w2, preferred_element_type=f32) + mu_b2
        ss = jnp.sum(mu * mu, axis=-1, keepdims=True)
        z = mu * jax.lax.rsqrt(jnp.maximum(ss, 1e-12))            # deterministic mean dir

        # -------- decoder: x@Wx and z@Wz + b both hoisted off the serial chain --------
        x2 = x2_ref[0]                                            # (Td*Bb, 128), time-major
        dec_pre = jnp.dot(x2.astype(bf16), dec_wx,
                          preferred_element_type=f32)             # (Td*Bb, 256)
        dec_base = jnp.dot(z, dec_wz, preferred_element_type=f32) + dec_b   # (Bb, 256)
        dec_pre = dec_pre + jnp.tile(dec_base, (Td, 1))           # added once, pre-loop

        h = jnp.zeros((Bb, H2), f32)
        c = jnp.zeros((Bb, H2), f32)
        hs = []
        for t in range(Td):                                       # static -> fully unrolled
            gates = dec_pre[t * Bb:(t + 1) * Bb, :] + jnp.dot(
                h.astype(bf16), dec_whh, preferred_element_type=f32)
            i, f, g, o = gate_acts(jnp.tanh(gates), H2)           # 1 EUP push on the gates
            c = f * c + i * g
            h = o * jnp.tanh(c)
            hs.append(h)                                          # stays in registers

        # ---- deferred lane-dense vocab head (no VMEM scratch slab) ----
        hcat = jnp.concatenate(hs, axis=0)                        # (Td*Bb, 2H) time-major
        logits = jnp.dot(hcat.astype(bf16), out_w,
                         preferred_element_type=f32) + out_b      # (Td*Bb, V_PAD)
        out_ref[0] = logits

    return kernel


def run_fused(x1_blk, x2_blk, f32_slab, bf16_slab, nb, Bb, Te, Td):
    kernel = make_fused_kernel(Bb, Te, Td)
    return pl.pallas_call(
        kernel,
        out_shape=jax.ShapeDtypeStruct((nb, Td * Bb, V_PAD), jnp.float32),
        grid=(nb,),
        in_specs=[
            pl.BlockSpec((1, Te * Bb, E_PAD), lambda n: (n, 0, 0)),
            pl.BlockSpec((1, Td * Bb, E_PAD), lambda n: (n, 0, 0)),
            pl.BlockSpec((F_ROWS, SLAB_W), lambda n: (0, 0)),
            pl.BlockSpec((BF_ROWS, SLAB_W), lambda n: (0, 0)),
        ],
        out_specs=pl.BlockSpec((1, Td * Bb, V_PAD), lambda n: (n, 0, 0)),
        compiler_params=pltpu.CompilerParams(
            dimension_semantics=("parallel",)),
    )(x1_blk, x2_blk, f32_slab, bf16_slab)


# ---------------------------------------------------------------------------
# vMF <-> hyperspherical-uniform KL (deterministic: depends only on m, kappa)
# ---------------------------------------------------------------------------
def _log_iv_series(v, x, n_terms=64):
    lx = math.log(x / 2.0)
    log_terms = [(2 * j + v) * lx - math.lgamma(j + 1) - math.lgamma(j + v + 1)
                 for j in range(n_terms)]
    mx = max(log_terms)
    return mx + math.log(sum(math.exp(t - mx) for t in log_terms))


def _vmf_kl_uniform(m, kappa):
    """KL( vMF(mu, kappa) || Uniform(S^{m-1}) ) per sample (mu-independent)."""
    log_iv_h = _log_iv_series(m / 2.0, kappa)
    log_iv_hm1 = _log_iv_series(m / 2.0 - 1.0, kappa)
    ratio = math.exp(log_iv_h - log_iv_hm1)
    log_c = ((m / 2.0 - 1.0) * math.log(kappa)
             - (m / 2.0) * math.log(2.0 * math.pi) - log_iv_hm1)
    log_area = math.log(2.0) + (m / 2.0) * math.log(math.pi) - math.lgamma(m / 2.0)
    return kappa * ratio + log_c + log_area


# ---------------------------------------------------------------------------
# Parameters: raw (natural shapes) -> packed kernel slabs
# ---------------------------------------------------------------------------
def init_raw_params(key):
    E, V, L = EMBEDDING_DIM, VOCAB_LEN, LATENT_SIZE
    ks = jax.random.split(key, 15)

    def rnd(k, shape, scale=0.1):
        return scale * jax.random.normal(k, shape, jnp.float32)

    return dict(
        emb=rnd(ks[0], (V, E)).at[PAD].set(0.0),      # padding_idx row zeroed
        # encoder bi-LSTM; biases are combined b_ih + b_hh
        enc_wih_f=rnd(ks[1], (E, G_ENC)),
        enc_whh_f=rnd(ks[2], (H, G_ENC)),
        enc_b_f=rnd(ks[3], (G_ENC,)),
        enc_wih_b=rnd(ks[4], (E, G_ENC)),
        enc_b_b=rnd(ks[5], (G_ENC,)),
        # context2mu MLP
        mu_w1=rnd(ks[6], (H2, MID)), mu_b1=rnd(ks[7], (MID,)),
        mu_w2=rnd(ks[8], (MID, L)), mu_b2=rnd(ks[9], (L,)),
        # decoder LSTM (input = [emb | z]); combined bias
        dec_wih=rnd(ks[10], (E + L, G_DEC)),
        dec_whh=rnd(ks[11], (H2, G_DEC)),
        dec_b=rnd(ks[12], (G_DEC,)),
        # output2vocab
        out_w=rnd(ks[13], (H2, VOCAB_LEN)),
        out_b=rnd(ks[14], (VOCAB_LEN,)),
    )


def pack_params(p):
    """Re-parameterize for the kernel: pad, 0.5-scale i/f/o gate columns
    (sigmoid-as-tanh fold), and pack everything into one bf16 + one f32 slab."""
    E, V, L = EMBEDDING_DIM, VOCAB_LEN, LATENT_SIZE

    def scale_ifo(w, hd):
        w = w.at[..., 0:2 * hd].multiply(0.5)
        return w.at[..., 3 * hd:4 * hd].multiply(0.5)

    emb_pad = jnp.zeros((V, E_PAD), jnp.float32).at[:, :E].set(p['emb'])

    # ---- bf16 weight slab (MXU operands) ----
    bf = jnp.zeros((BF_ROWS, SLAB_W), jnp.float32)
    wih_fb = jnp.concatenate([scale_ifo(p['enc_wih_f'], H),
                              scale_ifo(p['enc_wih_b'], H)], axis=1)   # (E, 256)
    bf = bf.at[BF_WIH_FB:BF_WIH_FB + E, :].set(wih_fb)
    bf = bf.at[BF_DEC_WX:BF_DEC_WX + E, :].set(scale_ifo(p['dec_wih'][:E], H2))
    bf = bf.at[BF_DEC_WHH:BF_DEC_WHH + H2, :].set(scale_ifo(p['dec_whh'], H2))
    bf = bf.at[BF_ENC_WHH:BF_ENC_WHH + H, :G_ENC].set(scale_ifo(p['enc_whh_f'], H))
    bf = bf.at[BF_OUT_W:BF_OUT_W + H2, :V].set(p['out_w'])
    bf16_slab = bf.astype(jnp.bfloat16)          # 0.5 scaling is exact in bf16

    # ---- f32 slab (biases, small weights, context2mu) ----
    f = jnp.zeros((F_ROWS, SLAB_W), jnp.float32)
    b_fb = jnp.concatenate([scale_ifo(p['enc_b_f'], H), scale_ifo(p['enc_b_b'], H)])
    f = f.at[F_B_FB, :].set(b_fb)
    f = f.at[F_DEC_B, :].set(scale_ifo(p['dec_b'], H2))
    f = f.at[F_DEC_WZ:F_DEC_WZ + L, :].set(scale_ifo(p['dec_wih'][E:], H2))
    f = f.at[F_OUT_B, :V].set(p['out_b'])
    f = f.at[F_MU_W1:F_MU_W1 + H2, :MID].set(p['mu_w1'])
    f = f.at[F_MU_B1, :MID].set(p['mu_b1'])
    f = f.at[F_MU_W2:F_MU_W2 + MID, :L].set(p['mu_w2'])
    f = f.at[F_MU_B2, :L].set(p['mu_b2'])

    return dict(emb_pad=emb_pad, f32_slab=f, bf16_slab=bf16_slab)


# ---------------------------------------------------------------------------
# Forward
# ---------------------------------------------------------------------------
def lstm_lm_vmf_forward(packed, encoder_input, decoder_input):
    B, Te = encoder_input.shape
    Td = decoder_input.shape[1]
    nb = NUM_BATCH_BLOCKS if B % NUM_BATCH_BLOCKS == 0 else 1
    Bb = B // nb

    emb = packed['emb_pad']
    # Time-major flat embedding gathers: transpose the tiny int index matrix
    # (row index = t*B + b), not the [B, T, E] float tensor.
    x1 = emb[encoder_input.T.reshape(-1)]                    # (Te*B, E_PAD)
    x2 = emb[decoder_input.T.reshape(-1)]                    # (Td*B, E_PAD)

    # Regroup into per-core batch blocks, time-major inside each block.
    x1 = x1.reshape(Te, nb, Bb, E_PAD).transpose(1, 0, 2, 3).reshape(nb, Te * Bb, E_PAD)
    x2 = x2.reshape(Td, nb, Bb, E_PAD).transpose(1, 0, 2, 3).reshape(nb, Td * Bb, E_PAD)

    out = run_fused(x1, x2, packed['f32_slab'], packed['bf16_slab'],
                    nb, Bb, Te, Td)                          # (nb, Td*Bb, V_PAD)
    logits = (out.reshape(nb, Td, Bb, V_PAD).transpose(0, 2, 1, 3)
                 .reshape(B, Td, V_PAD)[:, :, :VOCAB_LEN])   # (B, Td, V)

    # TODO(synk): VonMisesFisher.rsample() (Wood '94 rejection sampling +
    # Householder reflection) has no clean Pallas equivalent; z = mu (mean
    # direction) is used inside the kernel.  The vMF||hyperspherical-uniform
    # KL is mu-independent, so it is a closed-form constant summed over B
    # (matching `.sum(-1).sum()` in the reference).
    kld = jnp.asarray(B * _vmf_kl_uniform(LATENT_SIZE, KAPPA), jnp.float32)
    return logits, None, kld


if __name__ == "__main__":
    key = jax.random.PRNGKey(0)
    pkey, ekey, dkey = jax.random.split(key, 3)

    raw = init_raw_params(pkey)
    packed = pack_params(raw)

    B, T_ENC, T_DEC = 2, 8, 8
    encoder_input = jax.random.randint(ekey, (B, T_ENC), 1, VOCAB_LEN, jnp.int32)
    decoder_input = jax.random.randint(dkey, (B, T_DEC), 1, VOCAB_LEN, jnp.int32)

    fwd = jax.jit(lstm_lm_vmf_forward)
    logits, _, kld = fwd(packed, encoder_input, decoder_input)
    jax.block_until_ready(logits)
    jax.block_until_ready(kld)

    assert logits.shape == (B, T_DEC, VOCAB_LEN)
    assert logits.dtype == jnp.float32
    assert bool(jnp.isfinite(logits).all())
    assert bool(jnp.isfinite(kld))
    print("KERNEL_OK")
</pallas_src>

<mosaic_0001>
module attributes {stable_mosaic.version = 11 : i64} {
  func.func @kernel(%arg0: i32, %arg1: memref<1x16x128xf32, #tpu.memory_space<vmem>>, %arg2: memref<1x16x128xf32, #tpu.memory_space<vmem>>, %arg3: memref<160x256xf32, #tpu.memory_space<vmem>>, %arg4: memref<416x256xbf16, #tpu.memory_space<vmem>>, %arg5: memref<1x16x128xf32, #tpu.memory_space<vmem>>) attributes {dimension_semantics = [#tpu.dimension_semantics<parallel>], iteration_bounds = array<i64: 1>, scalar_prefetch = 0 : i64, scratch_operands = 0 : i64, tpu.core_type = #tpu.core_type<tc>, window_params = [{transform_indices = @transform_0, window_bounds = array<i64: 1, 16, 128>}, {transform_indices = @transform_1, window_bounds = array<i64: 1, 16, 128>}, {pipeline_mode = #tpu.pipeline_mode<synchronous>, transform_indices = @transform_2, window_bounds = array<i64: 160, 256>}, {pipeline_mode = #tpu.pipeline_mode<synchronous>, transform_indices = @transform_3, window_bounds = array<i64: 416, 256>}, {transform_indices = @transform_4, window_bounds = array<i64: 1, 16, 128>}]} {
    %c0 = arith.constant 0 : index
    %c0_0 = arith.constant 0 : index
    %0 = vector.load %arg4[%c0, %c0_0] : memref<416x256xbf16, #tpu.memory_space<vmem>>, vector<128x256xbf16>
    %c128 = arith.constant 128 : index
    %c0_1 = arith.constant 0 : index
    %1 = vector.load %arg4[%c128, %c0_1] : memref<416x256xbf16, #tpu.memory_space<vmem>>, vector<128x256xbf16>
    %c256 = arith.constant 256 : index
    %c0_2 = arith.constant 0 : index
    %2 = vector.load %arg4[%c256, %c0_2] : memref<416x256xbf16, #tpu.memory_space<vmem>>, vector<64x256xbf16>
    %c320 = arith.constant 320 : index
    %c0_3 = arith.constant 0 : index
    %3 = vector.load %arg4[%c320, %c0_3] : memref<416x256xbf16, #tpu.memory_space<vmem>>, vector<32x128xbf16>
    %c352 = arith.constant 352 : index
    %c0_4 = arith.constant 0 : index
    %4 = vector.load %arg4[%c352, %c0_4] : memref<416x256xbf16, #tpu.memory_space<vmem>>, vector<64x128xbf16>
    %c0_5 = arith.constant 0 : index
    %c0_6 = arith.constant 0 : index
    %5 = vector.load %arg3[%c0_5, %c0_6] : memref<160x256xf32, #tpu.memory_space<vmem>>, vector<1x256xf32>
    %c8 = arith.constant 8 : index
    %c0_7 = arith.constant 0 : index
    %6 = vector.load %arg3[%c8, %c0_7] : memref<160x256xf32, #tpu.memory_space<vmem>>, vector<1x256xf32>
    %c16 = arith.constant 16 : index
    %c0_8 = arith.constant 0 : index
    %7 = vector.load %arg3[%c16, %c0_8] : memref<160x256xf32, #tpu.memory_space<vmem>>, vector<16x256xf32>
    %c32 = arith.constant 32 : index
    %c0_9 = arith.constant 0 : index
    %8 = vector.load %arg3[%c32, %c0_9] : memref<160x256xf32, #tpu.memory_space<vmem>>, vector<1x128xf32>
    %c40 = arith.constant 40 : index
    %c0_10 = arith.constant 0 : index
    %9 = vector.load %arg3[%c40, %c0_10] : memref<160x256xf32, #tpu.memory_space<vmem>>, vector<64x40xf32>
    %c104 = arith.constant 104 : index
    %c0_11 = arith.constant 0 : index
    %10 = vector.load %arg3[%c104, %c0_11] : memref<160x256xf32, #tpu.memory_space<vmem>>, vector<1x40xf32>
    %c112 = arith.constant 112 : index
    %c0_12 = arith.constant 0 : index
    %11 = vector.load %arg3[%c112, %c0_12] : memref<160x256xf32, #tpu.memory_space<vmem>>, vector<40x16xf32>
    %c152 = arith.constant 152 : index
    %c0_13 = arith.constant 0 : index
    %12 = vector.load %arg3[%c152, %c0_13] : memref<160x256xf32, #tpu.memory_space<vmem>>, vector<1x16xf32>
    %c0_14 = arith.constant 0 : index
    %c0_15 = arith.constant 0 : index
    %c0_16 = arith.constant 0 : index
    %13 = vector.load %arg1[%c0_14, %c0_15, %c0_16] : memref<1x16x128xf32, #tpu.memory_space<vmem>>, vector<1x16x128xf32>
    %14 = vector.shape_cast %13 : vector<1x16x128xf32> to vector<16x128xf32>
    %15 = arith.truncf %14 : vector<16x128xf32> to vector<16x128xbf16>
    %cst = arith.constant dense<0.000000e+00> : vector<16x256xf32>
    %16 = tpu.matmul %15, %0, %cst {dimension_numbers = #tpu.dot_dimension_numbers<[1], [0], [0], [1], [0, 0, 1, 1], [], []>} : vector<16x128xbf16>, vector<128x256xbf16>, vector<16x256xf32> -> vector<16x256xf32>
    %17 = vector.broadcast %5 : vector<1x256xf32> to vector<16x256xf32>
    %18 = arith.addf %16, %17 : vector<16x256xf32>
    %19 = vector.extract_strided_slice %18 {offsets = [0, 0], sizes = [16, 128], strides = [1, 1]} : vector<16x256xf32> to vector<16x128xf32>
    %cst_17 = arith.constant 0.000000e+00 : f32
    %20 = vector.broadcast %cst_17 : f32 to vector<2x32xf32>
    %cst_18 = arith.constant 0.000000e+00 : f32
    %21 = vector.broadcast %cst_18 : f32 to vector<2x32xf32>
    %22 = vector.extract_strided_slice %19 {offsets = [0, 0], sizes = [2, 128], strides = [1, 1]} : vector<16x128xf32> to vector<2x128xf32>
    %23 = arith.truncf %20 : vector<2x32xf32> to vector<2x32xbf16>
    %cst_19 = arith.constant dense<0.000000e+00> : vector<2x128xf32>
    %24 = tpu.matmul %23, %3, %cst_19 {dimension_numbers = #tpu.dot_dimension_numbers<[1], [0], [0], [1], [0, 0, 1, 1], [], []>} : vector<2x32xbf16>, vector<32x128xbf16>, vector<2x128xf32> -> vector<2x128xf32>
    %25 = arith.addf %22, %24 : vector<2x128xf32>
    %26 = math.tanh %25 : vector<2x128xf32>
    %27 = vector.extract_strided_slice %26 {offsets = [0, 0], sizes = [2, 32], strides = [1, 1]} : vector<2x128xf32> to vector<2x32xf32>
    %cst_20 = arith.constant 5.000000e-01 : f32
    %28 = vector.broadcast %cst_20 : f32 to vector<2x32xf32>
    %29 = arith.mulf %28, %27 : vector<2x32xf32>
    %cst_21 = arith.constant 5.000000e-01 : f32
    %30 = vector.broadcast %cst_21 : f32 to vector<2x32xf32>
    %31 = arith.addf %29, %30 : vector<2x32xf32>
    %32 = vector.extract_strided_slice %26 {offsets = [0, 32], sizes = [2, 32], strides = [1, 1]} : vector<2x128xf32> to vector<2x32xf32>
    %cst_22 = arith.constant 5.000000e-01 : f32
    %33 = vector.broadcast %cst_22 : f32 to vector<2x32xf32>
    %34 = arith.mulf %33, %32 : vector<2x32xf32>
    %cst_23 = arith.constant 5.000000e-01 : f32
    %35 = vector.broadcast %cst_23 : f32 to vector<2x32xf32>
    %36 = arith.addf %34, %35 : vector<2x32xf32>
    %37 = vector.extract_strided_slice %26 {offsets = [0, 64], sizes = [2, 32], strides = [1, 1]} : vector<2x128xf32> to vector<2x32xf32>
    %38 = vector.extract_strided_slice %26 {offsets = [0, 96], sizes = [2, 32], strides = [1, 1]} : vector<2x128xf32> to vector<2x32xf32>
    %cst_24 = arith.constant 5.000000e-01 : f32
    %39 = vector.broadcast %cst_24 : f32 to vector<2x32xf32>
    %40 = arith.mulf %39, %38 : vector<2x32xf32>
    %cst_25 = arith.constant 5.000000e-01 : f32
    %41 = vector.broadcast %cst_25 : f32 to vector<2x32xf32>
    %42 = arith.addf %40, %41 : vector<2x32xf32>
    %43 = arith.mulf %36, %21 : vector<2x32xf32>
    %44 = arith.mulf %31, %37 : vector<2x32xf32>
    %45 = arith.addf %43, %44 : vector<2x32xf32>
    %46 = math.tanh %45 : vector<2x32xf32>
    %47 = arith.mulf %42, %46 : vector<2x32xf32>
    %48 = vector.extract_strided_slice %19 {offsets = [2, 0], sizes = [2, 128], strides = [1, 1]} : vector<16x128xf32> to vector<2x128xf32>
    %49 = arith.truncf %47 : vector<2x32xf32> to vector<2x32xbf16>
    %cst_26 = arith.constant dense<0.000000e+00> : vector<2x128xf32>
    %50 = tpu.matmul %49, %3, %cst_26 {dimension_numbers = #tpu.dot_dimension_numbers<[1], [0], [0], [1], [0, 0, 1, 1], [], []>} : vector<2x32xbf16>, vector<32x128xbf16>, vector<2x128xf32> -> vector<2x128xf32>
    %51 = arith.addf %48, %50 : vector<2x128xf32>
    %52 = math.tanh %51 : vector<2x128xf32>
    %53 = vector.extract_strided_slice %52 {offsets = [0, 0], sizes = [2, 32], strides = [1, 1]} : vector<2x128xf32> to vector<2x32xf32>
    %cst_27 = arith.constant 5.000000e-01 : f32
    %54 = vector.broadcast %cst_27 : f32 to vector<2x32xf32>
    %55 = arith.mulf %54, %53 : vector<2x32xf32>
    %cst_28 = arith.constant 5.000000e-01 : f32
    %56 = vector.broadcast %cst_28 : f32 to vector<2x32xf32>
    %57 = arith.addf %55, %56 : vector<2x32xf32>
    %58 = vector.extract_strided_slice %52 {offsets = [0, 32], sizes = [2, 32], strides = [1, 1]} : vector<2x128xf32> to vector<2x32xf32>
    %cst_29 = arith.constant 5.000000e-01 : f32
    %59 = vector.broadcast %cst_29 : f32 to vector<2x32xf32>
    %60 = arith.mulf %59, %58 : vector<2x32xf32>
    %cst_30 = arith.constant 5.000000e-01 : f32
    %61 = vector.broadcast %cst_30 : f32 to vector<2x32xf32>
    %62 = arith.addf %60, %61 : vector<2x32xf32>
    %63 = vector.extract_strided_slice %52 {offsets = [0, 64], sizes = [2, 32], strides = [1, 1]} : vector<2x128xf32> to vector<2x32xf32>
    %64 = vector.extract_strided_slice %52 {offsets = [0, 96], sizes = [2, 32], strides = [1, 1]} : vector<2x128xf32> to vector<2x32xf32>
    %cst_31 = arith.constant 5.000000e-01 : f32
    %65 = vector.broadcast %cst_31 : f32 to vector<2x32xf32>
    %66 = arith.mulf %65, %64 : vector<2x32xf32>
    %cst_32 = arith.constant 5.000000e-01 : f32
    %67 = vector.broadcast %cst_32 : f32 to vector<2x32xf32>
    %68 = arith.addf %66, %67 : vector<2x32xf32>
    %69 = arith.mulf %62, %45 : vector<2x32xf32>
    %70 = arith.mulf %57, %63 : vector<2x32xf32>
    %71 = arith.addf %69, %70 : vector<2x32xf32>
    %72 = math.tanh %71 : vector<2x32xf32>
    %73 = arith.mulf %68, %72 : vector<2x32xf32>
    %74 = vector.extract_strided_slice %19 {offsets = [4, 0], sizes = [2, 128], strides = [1, 1]} : vector<16x128xf32> to vector<2x128xf32>
    %75 = arith.truncf %73 : vector<2x32xf32> to vector<2x32xbf16>
    %cst_33 = arith.constant dense<0.000000e+00> : vector<2x128xf32>
    %76 = tpu.matmul %75, %3, %cst_33 {dimension_numbers = #tpu.dot_dimension_numbers<[1], [0], [0], [1], [0, 0, 1, 1], [], []>} : vector<2x32xbf16>, vector<32x128xbf16>, vector<2x128xf32> -> vector<2x128xf32>
    %77 = arith.addf %74, %76 : vector<2x128xf32>
    %78 = math.tanh %77 : vector<2x128xf32>
    %79 = vector.extract_strided_slice %78 {offsets = [0, 0], sizes = [2, 32], strides = [1, 1]} : vector<2x128xf32> to vector<2x32xf32>
    %cst_34 = arith.constant 5.000000e-01 : f32
    %80 = vector.broadcast %cst_34 : f32 to vector<2x32xf32>
    %81 = arith.mulf %80, %79 : vector<2x32xf32>
    %cst_35 = arith.constant 5.000000e-01 : f32
    %82 = vector.broadcast %cst_35 : f32 to vector<2x32xf32>
    %83 = arith.addf %81, %82 : vector<2x32xf32>
    %84 = vector.extract_strided_slice %78 {offsets = [0, 32], sizes = [2, 32], strides = [1, 1]} : vector<2x128xf32> to vector<2x32xf32>
    %cst_36 = arith.constant 5.000000e-01 : f32
    %85 = vector.broadcast %cst_36 : f32 to vector<2x32xf32>
    %86 = arith.mulf %85, %84 : vector<2x32xf32>
    %cst_37 = arith.constant 5.000000e-01 : f32
    %87 = vector.broadcast %cst_37 : f32 to vector<2x32xf32>
    %88 = arith.addf %86, %87 : vector<2x32xf32>
    %89 = vector.extract_strided_slice %78 {offsets = [0, 64], sizes = [2, 32], strides = [1, 1]} : vector<2x128xf32> to vector<2x32xf32>
    %90 = vector.extract_strided_slice %78 {offsets = [0, 96], sizes = [2, 32], strides = [1, 1]} : vector<2x128xf32> to vector<2x32xf32>
    %cst_38 = arith.constant 5.000000e-01 : f32
    %91 = vector.broadcast %cst_38 : f32 to vector<2x32xf32>
    %92 = arith.mulf %91, %90 : vector<2x32xf32>
    %cst_39 = arith.constant 5.000000e-01 : f32
    %93 = vector.broadcast %cst_39 : f32 to vector<2x32xf32>
    %94 = arith.addf %92, %93 : vector<2x32xf32>
    %95 = arith.mulf %88, %71 : vector<2x32xf32>
    %96 = arith.mulf %83, %89 : vector<2x32xf32>
    %97 = arith.addf %95, %96 : vector<2x32xf32>
    %98 = math.tanh %97 : vector<2x32xf32>
    %99 = arith.mulf %94, %98 : vector<2x32xf32>
    %100 = vector.extract_strided_slice %19 {offsets = [6, 0], sizes = [2, 128], strides = [1, 1]} : vector<16x128xf32> to vector<2x128xf32>
    %101 = arith.truncf %99 : vector<2x32xf32> to vector<2x32xbf16>
    %cst_40 = arith.constant dense<0.000000e+00> : vector<2x128xf32>
    %102 = tpu.matmul %101, %3, %cst_40 {dimension_numbers = #tpu.dot_dimension_numbers<[1], [0], [0], [1], [0, 0, 1, 1], [], []>} : vector<2x32xbf16>, vector<32x128xbf16>, vector<2x128xf32> -> vector<2x128xf32>
    %103 = arith.addf %100, %102 : vector<2x128xf32>
    %104 = math.tanh %103 : vector<2x128xf32>
    %105 = vector.extract_strided_slice %104 {offsets = [0, 0], sizes = [2, 32], strides = [1, 1]} : vector<2x128xf32> to vector<2x32xf32>
    %cst_41 = arith.constant 5.000000e-01 : f32
    %106 = vector.broadcast %cst_41 : f32 to vector<2x32xf32>
    %107 = arith.mulf %106, %105 : vector<2x32xf32>
    %cst_42 = arith.constant 5.000000e-01 : f32
    %108 = vector.broadcast %cst_42 : f32 to vector<2x32xf32>
    %109 = arith.addf %107, %108 : vector<2x32xf32>
    %110 = vector.extract_strided_slice %104 {offsets = [0, 32], sizes = [2, 32], strides = [1, 1]} : vector<2x128xf32> to vector<2x32xf32>
    %cst_43 = arith.constant 5.000000e-01 : f32
    %111 = vector.broadcast %cst_43 : f32 to vector<2x32xf32>
    %112 = arith.mulf %111, %110 : vector<2x32xf32>
    %cst_44 = arith.constant 5.000000e-01 : f32
    %113 = vector.broadcast %cst_44 : f32 to vector<2x32xf32>
    %114 = arith.addf %112, %113 : vector<2x32xf32>
    %115 = vector.extract_strided_slice %104 {offsets = [0, 64], sizes = [2, 32], strides = [1, 1]} : vector<2x128xf32> to vector<2x32xf32>
    %116 = vector.extract_strided_slice %104 {offsets = [0, 96], sizes = [2, 32], strides = [1, 1]} : vector<2x128xf32> to vector<2x32xf32>
    %cst_45 = arith.constant 5.000000e-01 : f32
    %117 = vector.broadcast %cst_45 : f32 to vector<2x32xf32>
    %118 = arith.mulf %117, %116 : vector<2x32xf32>
    %cst_46 = arith.constant 5.000000e-01 : f32
    %119 = vector.broadcast %cst_46 : f32 to vector<2x32xf32>
    %120 = arith.addf %118, %119 : vector<2x32xf32>
    %121 = arith.mulf %114, %97 : vector<2x32xf32>
    %122 = arith.mulf %109, %115 : vector<2x32xf32>
    %123 = arith.addf %121, %122 : vector<2x32xf32>
    %124 = math.tanh %123 : vector<2x32xf32>
    %125 = arith.mulf %120, %124 : vector<2x32xf32>
    %126 = vector.extract_strided_slice %19 {offsets = [8, 0], sizes = [2, 128], strides = [1, 1]} : vector<16x128xf32> to vector<2x128xf32>
    %127 = arith.truncf %125 : vector<2x32xf32> to vector<2x32xbf16>
    %cst_47 = arith.constant dense<0.000000e+00> : vector<2x128xf32>
    %128 = tpu.matmul %127, %3, %cst_47 {dimension_numbers = #tpu.dot_dimension_numbers<[1], [0], [0], [1], [0, 0, 1, 1], [], []>} : vector<2x32xbf16>, vector<32x128xbf16>, vector<2x128xf32> -> vector<2x128xf32>
    %129 = arith.addf %126, %128 : vector<2x128xf32>
    %130 = math.tanh %129 : vector<2x128xf32>
    %131 = vector.extract_strided_slice %130 {offsets = [0, 0], sizes = [2, 32], strides = [1, 1]} : vector<2x128xf32> to vector<2x32xf32>
    %cst_48 = arith.constant 5.000000e-01 : f32
    %132 = vector.broadcast %cst_48 : f32 to vector<2x32xf32>
    %133 = arith.mulf %132, %131 : vector<2x32xf32>
    %cst_49 = arith.constant 5.000000e-01 : f32
    %134 = vector.broadcast %cst_49 : f32 to vector<2x32xf32>
    %135 = arith.addf %133, %134 : vector<2x32xf32>
    %136 = vector.extract_strided_slice %130 {offsets = [0, 32], sizes = [2, 32], strides = [1, 1]} : vector<2x128xf32> to vector<2x32xf32>
    %cst_50 = arith.constant 5.000000e-01 : f32
    %137 = vector.broadcast %cst_50 : f32 to vector<2x32xf32>
    %138 = arith.mulf %137, %136 : vector<2x32xf32>
    %cst_51 = arith.constant 5.000000e-01 : f32
    %139 = vector.broadcast %cst_51 : f32 to vector<2x32xf32>
    %140 = arith.addf %138, %139 : vector<2x32xf32>
    %141 = vector.extract_strided_slice %130 {offsets = [0, 64], sizes = [2, 32], strides = [1, 1]} : vector<2x128xf32> to vector<2x32xf32>
    %142 = vector.extract_strided_slice %130 {offsets = [0, 96], sizes = [2, 32], strides = [1, 1]} : vector<2x128xf32> to vector<2x32xf32>
    %cst_52 = arith.constant 5.000000e-01 : f32
    %143 = vector.broadcast %cst_52 : f32 to vector<2x32xf32>
    %144 = arith.mulf %143, %142 : vector<2x32xf32>
    %cst_53 = arith.constant 5.000000e-01 : f32
    %145 = vector.broadcast %cst_53 : f32 to vector<2x32xf32>
    %146 = arith.addf %144, %145 : vector<2x32xf32>
    %147 = arith.mulf %140, %123 : vector<2x32xf32>
    %148 = arith.mulf %135, %141 : vector<2x32xf32>
    %149 = arith.addf %147, %148 : vector<2x32xf32>
    %150 = math.tanh %149 : vector<2x32xf32>
    %151 = arith.mulf %146, %150 : vector<2x32xf32>
    %152 = vector.extract_strided_slice %19 {offsets = [10, 0], sizes = [2, 128], strides = [1, 1]} : vector<16x128xf32> to vector<2x128xf32>
    %153 = arith.truncf %151 : vector<2x32xf32> to vector<2x32xbf16>
    %cst_54 = arith.constant dense<0.000000e+00> : vector<2x128xf32>
    %154 = tpu.matmul %153, %3, %cst_54 {dimension_numbers = #tpu.dot_dimension_numbers<[1], [0], [0], [1], [0, 0, 1, 1], [], []>} : vector<2x32xbf16>, vector<32x128xbf16>, vector<2x128xf32> -> vector<2x128xf32>
    %155 = arith.addf %152, %154 : vector<2x128xf32>
    %156 = math.tanh %155 : vector<2x128xf32>
    %157 = vector.extract_strided_slice %156 {offsets = [0, 0], sizes = [2, 32], strides = [1, 1]} : vector<2x128xf32> to vector<2x32xf32>
    %cst_55 = arith.constant 5.000000e-01 : f32
    %158 = vector.broadcast %cst_55 : f32 to vector<2x32xf32>
    %159 = arith.mulf %158, %157 : vector<2x32xf32>
    %cst_56 = arith.constant 5.000000e-01 : f32
    %160 = vector.broadcast %cst_56 : f32 to vector<2x32xf32>
    %161 = arith.addf %159, %160 : vector<2x32xf32>
    %162 = vector.extract_strided_slice %156 {offsets = [0, 32], sizes = [2, 32], strides = [1, 1]} : vector<2x128xf32> to vector<2x32xf32>
    %cst_57 = arith.constant 5.000000e-01 : f32
    %163 = vector.broadcast %cst_57 : f32 to vector<2x32xf32>
    %164 = arith.mulf %163, %162 : vector<2x32xf32>
    %cst_58 = arith.constant 5.000000e-01 : f32
    %165 = vector.broadcast %cst_58 : f32 to vector<2x32xf32>
    %166 = arith.addf %164, %165 : vector<2x32xf32>
    %167 = vector.extract_strided_slice %156 {offsets = [0, 64], sizes = [2, 32], strides = [1, 1]} : vector<2x128xf32> to vector<2x32xf32>
    %168 = vector.extract_strided_slice %156 {offsets = [0, 96], sizes = [2, 32], strides = [1, 1]} : vector<2x128xf32> to vector<2x32xf32>
    %cst_59 = arith.constant 5.000000e-01 : f32
    %169 = vector.broadcast %cst_59 : f32 to vector<2x32xf32>
    %170 = arith.mulf %169, %168 : vector<2x32xf32>
    %cst_60 = arith.constant 5.000000e-01 : f32
    %171 = vector.broadcast %cst_60 : f32 to vector<2x32xf32>
    %172 = arith.addf %170, %171 : vector<2x32xf32>
    %173 = arith.mulf %166, %149 : vector<2x32xf32>
    %174 = arith.mulf %161, %167 : vector<2x32xf32>
    %175 = arith.addf %173, %174 : vector<2x32xf32>
    %176 = math.tanh %175 : vector<2x32xf32>
    %177 = arith.mulf %172, %176 : vector<2x32xf32>
    %178 = vector.extract_strided_slice %19 {offsets = [12, 0], sizes = [2, 128], strides = [1, 1]} : vector<16x128xf32> to vector<2x128xf32>
    %179 = arith.truncf %177 : vector<2x32xf32> to vector<2x32xbf16>
    %cst_61 = arith.constant dense<0.000000e+00> : vector<2x128xf32>
    %180 = tpu.matmul %179, %3, %cst_61 {dimension_numbers = #tpu.dot_dimension_numbers<[1], [0], [0], [1], [0, 0, 1, 1], [], []>} : vector<2x32xbf16>, vector<32x128xbf16>, vector<2x128xf32> -> vector<2x128xf32>
    %181 = arith.addf %178, %180 : vector<2x128xf32>
    %182 = math.tanh %181 : vector<2x128xf32>
    %183 = vector.extract_strided_slice %182 {offsets = [0, 0], sizes = [2, 32], strides = [1, 1]} : vector<2x128xf32> to vector<2x32xf32>
    %cst_62 = arith.constant 5.000000e-01 : f32
    %184 = vector.broadcast %cst_62 : f32 to vector<2x32xf32>
    %185 = arith.mulf %184, %183 : vector<2x32xf32>
    %cst_63 = arith.constant 5.000000e-01 : f32
    %186 = vector.broadcast %cst_63 : f32 to vector<2x32xf32>
    %187 = arith.addf %185, %186 : vector<2x32xf32>
    %188 = vector.extract_strided_slice %182 {offsets = [0, 32], sizes = [2, 32], strides = [1, 1]} : vector<2x128xf32> to vector<2x32xf32>
    %cst_64 = arith.constant 5.000000e-01 : f32
    %189 = vector.broadcast %cst_64 : f32 to vector<2x32xf32>
    %190 = arith.mulf %189, %188 : vector<2x32xf32>
    %cst_65 = arith.constant 5.000000e-01 : f32
    %191 = vector.broadcast %cst_65 : f32 to vector<2x32xf32>
    %192 = arith.addf %190, %191 : vector<2x32xf32>
    %193 = vector.extract_strided_slice %182 {offsets = [0, 64], sizes = [2, 32], strides = [1, 1]} : vector<2x128xf32> to vector<2x32xf32>
    %194 = vector.extract_strided_slice %182 {offsets = [0, 96], sizes = [2, 32], strides = [1, 1]} : vector<2x128xf32> to vector<2x32xf32>
    %cst_66 = arith.constant 5.000000e-01 : f32
    %195 = vector.broadcast %cst_66 : f32 to vector<2x32xf32>
    %196 = arith.mulf %195, %194 : vector<2x32xf32>
    %cst_67 = arith.constant 5.000000e-01 : f32
    %197 = vector.broadcast %cst_67 : f32 to vector<2x32xf32>
    %198 = arith.addf %196, %197 : vector<2x32xf32>
    %199 = arith.mulf %192, %175 : vector<2x32xf32>
    %200 = arith.mulf %187, %193 : vector<2x32xf32>
    %201 = arith.addf %199, %200 : vector<2x32xf32>
    %202 = math.tanh %201 : vector<2x32xf32>
    %203 = arith.mulf %198, %202 : vector<2x32xf32>
    %204 = vector.extract_strided_slice %19 {offsets = [14, 0], sizes = [2, 128], strides = [1, 1]} : vector<16x128xf32> to vector<2x128xf32>
    %205 = arith.truncf %203 : vector<2x32xf32> to vector<2x32xbf16>
    %cst_68 = arith.constant dense<0.000000e+00> : vector<2x128xf32>
    %206 = tpu.matmul %205, %3, %cst_68 {dimension_numbers = #tpu.dot_dimension_numbers<[1], [0], [0], [1], [0, 0, 1, 1], [], []>} : vector<2x32xbf16>, vector<32x128xbf16>, vector<2x128xf32> -> vector<2x128xf32>
    %207 = arith.addf %204, %206 : vector<2x128xf32>
    %208 = math.tanh %207 : vector<2x128xf32>
    %209 = vector.extract_strided_slice %208 {offsets = [0, 0], sizes = [2, 32], strides = [1, 1]} : vector<2x128xf32> to vector<2x32xf32>
    %cst_69 = arith.constant 5.000000e-01 : f32
    %210 = vector.broadcast %cst_69 : f32 to vector<2x32xf32>
    %211 = arith.mulf %210, %209 : vector<2x32xf32>
    %cst_70 = arith.constant 5.000000e-01 : f32
    %212 = vector.broadcast %cst_70 : f32 to vector<2x32xf32>
    %213 = arith.addf %211, %212 : vector<2x32xf32>
    %214 = vector.extract_strided_slice %208 {offsets = [0, 32], sizes = [2, 32], strides = [1, 1]} : vector<2x128xf32> to vector<2x32xf32>
    %cst_71 = arith.constant 5.000000e-01 : f32
    %215 = vector.broadcast %cst_71 : f32 to vector<2x32xf32>
    %216 = arith.mulf %215, %214 : vector<2x32xf32>
    %cst_72 = arith.constant 5.000000e-01 : f32
    %217 = vector.broadcast %cst_72 : f32 to vector<2x32xf32>
    %218 = arith.addf %216, %217 : vector<2x32xf32>
    %219 = vector.extract_strided_slice %208 {offsets = [0, 64], sizes = [2, 32], strides = [1, 1]} : vector<2x128xf32> to vector<2x32xf32>
    %220 = vector.extract_strided_slice %208 {offsets = [0, 96], sizes = [2, 32], strides = [1, 1]} : vector<2x128xf32> to vector<2x32xf32>
    %cst_73 = arith.constant 5.000000e-01 : f32
    %221 = vector.broadcast %cst_73 : f32 to vector<2x32xf32>
    %222 = arith.mulf %221, %220 : vector<2x32xf32>
    %cst_74 = arith.constant 5.000000e-01 : f32
    %223 = vector.broadcast %cst_74 : f32 to vector<2x32xf32>
    %224 = arith.addf %222, %223 : vector<2x32xf32>
    %225 = arith.mulf %218, %201 : vector<2x32xf32>
    %226 = arith.mulf %213, %219 : vector<2x32xf32>
    %227 = arith.addf %225, %226 : vector<2x32xf32>
    %228 = math.tanh %227 : vector<2x32xf32>
    %229 = arith.mulf %224, %228 : vector<2x32xf32>
    %230 = vector.extract_strided_slice %18 {offsets = [14, 128], sizes = [2, 128], strides = [1, 1]} : vector<16x256xf32> to vector<2x128xf32>
    %231 = math.tanh %230 : vector<2x128xf32>
    %232 = vector.extract_strided_slice %231 {offsets = [0, 0], sizes = [2, 32], strides = [1, 1]} : vector<2x128xf32> to vector<2x32xf32>
    %cst_75 = arith.constant 5.000000e-01 : f32
    %233 = vector.broadcast %cst_75 : f32 to vector<2x32xf32>
    %234 = arith.mulf %233, %232 : vector<2x32xf32>
    %cst_76 = arith.constant 5.000000e-01 : f32
    %235 = vector.broadcast %cst_76 : f32 to vector<2x32xf32>
    %236 = arith.addf %234, %235 : vector<2x32xf32>
    %237 = vector.extract_strided_slice %231 {offsets = [0, 64], sizes = [2, 32], strides = [1, 1]} : vector<2x128xf32> to vector<2x32xf32>
    %238 = arith.mulf %236, %237 : vector<2x32xf32>
    %239 = vector.extract_strided_slice %231 {offsets = [0, 96], sizes = [2, 32], strides = [1, 1]} : vector<2x128xf32> to vector<2x32xf32>
    %cst_77 = arith.constant 5.000000e-01 : f32
    %240 = vector.broadcast %cst_77 : f32 to vector<2x32xf32>
    %241 = arith.mulf %240, %239 : vector<2x32xf32>
    %cst_78 = arith.constant 5.000000e-01 : f32
    %242 = vector.broadcast %cst_78 : f32 to vector<2x32xf32>
    %243 = arith.addf %241, %242 : vector<2x32xf32>
    %244 = math.tanh %238 : vector<2x32xf32>
    %245 = arith.mulf %243, %244 : vector<2x32xf32>
    %246 = tpu.concatenate %229, %245 in 1 : vector<2x32xf32>, vector<2x32xf32> -> vector<2x64xf32>
    %cst_79 = arith.constant dense<0.000000e+00> : vector<2x40xf32>
    %247 = tpu.matmul %246, %9, %cst_79 {dimension_numbers = #tpu.dot_dimension_numbers<[1], [0], [0], [1], [0, 0, 1, 1], [], []>} : vector<2x64xf32>, vector<64x40xf32>, vector<2x40xf32> -> vector<2x40xf32>
    %248 = vector.broadcast %10 : vector<1x40xf32> to vector<2x40xf32>
    %249 = arith.addf %247, %248 : vector<2x40xf32>
    %cst_80 = arith.constant 0.000000e+00 : f32
    %250 = vector.broadcast %cst_80 : f32 to vector<2x40xf32>
    %251 = arith.maximumf %249, %250 : vector<2x40xf32>
    %cst_81 = arith.constant dense<0.000000e+00> : vector<2x16xf32>
    %252 = tpu.matmul %251, %11, %cst_81 {dimension_numbers = #tpu.dot_dimension_numbers<[1], [0], [0], [1], [0, 0, 1, 1], [], []>} : vector<2x40xf32>, vector<40x16xf32>, vector<2x16xf32> -> vector<2x16xf32>
    %253 = vector.broadcast %12 : vector<1x16xf32> to vector<2x16xf32>
    %254 = arith.addf %252, %253 : vector<2x16xf32>
    %255 = arith.mulf %254, %254 : vector<2x16xf32>
    %cst_82 = arith.constant dense<0.000000e+00> : vector<2xf32>
    %256 = vector.multi_reduction <add>, %255, %cst_82 [1] : vector<2x16xf32> to vector<2xf32>
    %257 = vector.shape_cast %256 : vector<2xf32> to vector<2x1xf32>
    %cst_83 = arith.constant 9.99999996E-13 : f32
    %258 = vector.broadcast %cst_83 : f32 to vector<2x1xf32>
    %259 = arith.maximumf %257, %258 : vector<2x1xf32>
    %260 = math.rsqrt %259 : vector<2x1xf32>
    %261 = vector.broadcast %260 : vector<2x1xf32> to vector<2x16xf32>
    %262 = arith.mulf %254, %261 : vector<2x16xf32>
    %c0_84 = arith.constant 0 : index
    %c0_85 = arith.constant 0 : index
    %c0_86 = arith.constant 0 : index
    %263 = vector.load %arg2[%c0_84, %c0_85, %c0_86] : memref<1x16x128xf32, #tpu.memory_space<vmem>>, vector<1x16x128xf32>
    %264 = vector.shape_cast %263 : vector<1x16x128xf32> to vector<16x128xf32>
    %265 = arith.truncf %264 : vector<16x128xf32> to vector<16x128xbf16>
    %cst_87 = arith.constant dense<0.000000e+00> : vector<16x256xf32>
    %266 = tpu.matmul %265, %1, %cst_87 {dimension_numbers = #tpu.dot_dimension_numbers<[1], [0], [0], [1], [0, 0, 1, 1], [], []>} : vector<16x128xbf16>, vector<128x256xbf16>, vector<16x256xf32> -> vector<16x256xf32>
    %cst_88 = arith.constant dense<0.000000e+00> : vector<2x256xf32>
    %267 = tpu.matmul %262, %7, %cst_88 {dimension_numbers = #tpu.dot_dimension_numbers<[1], [0], [0], [1], [0, 0, 1, 1], [], []>} : vector<2x16xf32>, vector<16x256xf32>, vector<2x256xf32> -> vector<2x256xf32>
    %268 = vector.broadcast %6 : vector<1x256xf32> to vector<2x256xf32>
    %269 = arith.addf %267, %268 : vector<2x256xf32>
    %270 = tpu.concatenate %269, %269, %269, %269, %269, %269, %269, %269 in 0 : vector<2x256xf32>, vector<2x256xf32>, vector<2x256xf32>, vector<2x256xf32>, vector<2x256xf32>, vector<2x256xf32>, vector<2x256xf32>, vector<2x256xf32> -> vector<16x256xf32>
    %271 = arith.addf %266, %270 : vector<16x256xf32>
    %cst_89 = arith.constant 0.000000e+00 : f32
    %272 = vector.broadcast %cst_89 : f32 to vector<2x64xf32>
    %cst_90 = arith.constant 0.000000e+00 : f32
    %273 = vector.broadcast %cst_90 : f32 to vector<2x64xf32>
    %274 = vector.extract_strided_slice %271 {offsets = [0, 0], sizes = [2, 256], strides = [1, 1]} : vector<16x256xf32> to vector<2x256xf32>
    %275 = arith.truncf %272 : vector<2x64xf32> to vector<2x64xbf16>
    %cst_91 = arith.constant dense<0.000000e+00> : vector<2x256xf32>
    %276 = tpu.matmul %275, %2, %cst_91 {dimension_numbers = #tpu.dot_dimension_numbers<[1], [0], [0], [1], [0, 0, 1, 1], [], []>} : vector<2x64xbf16>, vector<64x256xbf16>, vector<2x256xf32> -> vector<2x256xf32>
    %277 = arith.addf %274, %276 : vector<2x256xf32>
    %278 = math.tanh %277 : vector<2x256xf32>
    %279 = vector.extract_strided_slice %278 {offsets = [0, 0], sizes = [2, 64], strides = [1, 1]} : vector<2x256xf32> to vector<2x64xf32>
    %cst_92 = arith.constant 5.000000e-01 : f32
    %280 = vector.broadcast %cst_92 : f32 to vector<2x64xf32>
    %281 = arith.mulf %280, %279 : vector<2x64xf32>
    %cst_93 = arith.constant 5.000000e-01 : f32
    %282 = vector.broadcast %cst_93 : f32 to vector<2x64xf32>
    %283 = arith.addf %281, %282 : vector<2x64xf32>
    %284 = vector.extract_strided_slice %278 {offsets = [0, 64], sizes = [2, 64], strides = [1, 1]} : vector<2x256xf32> to vector<2x64xf32>
    %cst_94 = arith.constant 5.000000e-01 : f32
    %285 = vector.broadcast %cst_94 : f32 to vector<2x64xf32>
    %286 = arith.mulf %285, %284 : vector<2x64xf32>
    %cst_95 = arith.constant 5.000000e-01 : f32
    %287 = vector.broadcast %cst_95 : f32 to vector<2x64xf32>
    %288 = arith.addf %286, %287 : vector<2x64xf32>
    %289 = vector.extract_strided_slice %278 {offsets = [0, 128], sizes = [2, 64], strides = [1, 1]} : vector<2x256xf32> to vector<2x64xf32>
    %290 = vector.extract_strided_slice %278 {offsets = [0, 192], sizes = [2, 64], strides = [1, 1]} : vector<2x256xf32> to vector<2x64xf32>
    %cst_96 = arith.constant 5.000000e-01 : f32
    %291 = vector.broadcast %cst_96 : f32 to vector<2x64xf32>
    %292 = arith.mulf %291, %290 : vector<2x64xf32>
    %cst_97 = arith.constant 5.000000e-01 : f32
    %293 = vector.broadcast %cst_97 : f32 to vector<2x64xf32>
    %294 = arith.addf %292, %293 : vector<2x64xf32>
    %295 = arith.mulf %288, %273 : vector<2x64xf32>
    %296 = arith.mulf %283, %289 : vector<2x64xf32>
    %297 = arith.addf %295, %296 : vector<2x64xf32>
    %298 = math.tanh %297 : vector<2x64xf32>
    %299 = arith.mulf %294, %298 : vector<2x64xf32>
    %300 = vector.extract_strided_slice %271 {offsets = [2, 0], sizes = [2, 256], strides = [1, 1]} : vector<16x256xf32> to vector<2x256xf32>
    %301 = arith.truncf %299 : vector<2x64xf32> to vector<2x64xbf16>
    %cst_98 = arith.constant dense<0.000000e+00> : vector<2x256xf32>
    %302 = tpu.matmul %301, %2, %cst_98 {dimension_numbers = #tpu.dot_dimension_numbers<[1], [0], [0], [1], [0, 0, 1, 1], [], []>} : vector<2x64xbf16>, vector<64x256xbf16>, vector<2x256xf32> -> vector<2x256xf32>
    %303 = arith.addf %300, %302 : vector<2x256xf32>
    %304 = math.tanh %303 : vector<2x256xf32>
    %305 = vector.extract_strided_slice %304 {offsets = [0, 0], sizes = [2, 64], strides = [1, 1]} : vector<2x256xf32> to vector<2x64xf32>
    %cst_99 = arith.constant 5.000000e-01 : f32
    %306 = vector.broadcast %cst_99 : f32 to vector<2x64xf32>
    %307 = arith.mulf %306, %305 : vector<2x64xf32>
    %cst_100 = arith.constant 5.000000e-01 : f32
    %308 = vector.broadcast %cst_100 : f32 to vector<2x64xf32>
    %309 = arith.addf %307, %308 : vector<2x64xf32>
    %310 = vector.extract_strided_slice %304 {offsets = [0, 64], sizes = [2, 64], strides = [1, 1]} : vector<2x256xf32> to vector<2x64xf32>
    %cst_101 = arith.constant 5.000000e-01 : f32
    %311 = vector.broadcast %cst_101 : f32 to vector<2x64xf32>
    %312 = arith.mulf %311, %310 : vector<2x64xf32>
    %cst_102 = arith.constant 5.000000e-01 : f32
    %313 = vector.broadcast %cst_102 : f32 to vector<2x64xf32>
    %314 = arith.addf %312, %313 : vector<2x64xf32>
    %315 = vector.extract_strided_slice %304 {offsets = [0, 128], sizes = [2, 64], strides = [1, 1]} : vector<2x256xf32> to vector<2x64xf32>
    %316 = vector.extract_strided_slice %304 {offsets = [0, 192], sizes = [2, 64], strides = [1, 1]} : vector<2x256xf32> to vector<2x64xf32>
    %cst_103 = arith.constant 5.000000e-01 : f32
    %317 = vector.broadcast %cst_103 : f32 to vector<2x64xf32>
    %318 = arith.mulf %317, %316 : vector<2x64xf32>
    %cst_104 = arith.constant 5.000000e-01 : f32
    %319 = vector.broadcast %cst_104 : f32 to vector<2x64xf32>
    %320 = arith.addf %318, %319 : vector<2x64xf32>
    %321 = arith.mulf %314, %297 : vector<2x64xf32>
    %322 = arith.mulf %309, %315 : vector<2x64xf32>
    %323 = arith.addf %321, %322 : vector<2x64xf32>
    %324 = math.tanh %323 : vector<2x64xf32>
    %325 = arith.mulf %320, %324 : vector<2x64xf32>
    %326 = vector.extract_strided_slice %271 {offsets = [4, 0], sizes = [2, 256], strides = [1, 1]} : vector<16x256xf32> to vector<2x256xf32>
    %327 = arith.truncf %325 : vector<2x64xf32> to vector<2x64xbf16>
    %cst_105 = arith.constant dense<0.000000e+00> : vector<2x256xf32>
    %328 = tpu.matmul %327, %2, %cst_105 {dimension_numbers = #tpu.dot_dimension_numbers<[1], [0], [0], [1], [0, 0, 1, 1], [], []>} : vector<2x64xbf16>, vector<64x256xbf16>, vector<2x256xf32> -> vector<2x256xf32>
    %329 = arith.addf %326, %328 : vector<2x256xf32>
    %330 = math.tanh %329 : vector<2x256xf32>
    %331 = vector.extract_strided_slice %330 {offsets = [0, 0], sizes = [2, 64], strides = [1, 1]} : vector<2x256xf32> to vector<2x64xf32>
    %cst_106 = arith.constant 5.000000e-01 : f32
    %332 = vector.broadcast %cst_106 : f32 to vector<2x64xf32>
    %333 = arith.mulf %332, %331 : vector<2x64xf32>
    %cst_107 = arith.constant 5.000000e-01 : f32
    %334 = vector.broadcast %cst_107 : f32 to vector<2x64xf32>
    %335 = arith.addf %333, %334 : vector<2x64xf32>
    %336 = vector.extract_strided_slice %330 {offsets = [0, 64], sizes = [2, 64], strides = [1, 1]} : vector<2x256xf32> to vector<2x64xf32>
    %cst_108 = arith.constant 5.000000e-01 : f32
    %337 = vector.broadcast %cst_108 : f32 to vector<2x64xf32>
    %338 = arith.mulf %337, %336 : vector<2x64xf32>
    %cst_109 = arith.constant 5.000000e-01 : f32
    %339 = vector.broadcast %cst_109 : f32 to vector<2x64xf32>
    %340 = arith.addf %338, %339 : vector<2x64xf32>
    %341 = vector.extract_strided_slice %330 {offsets = [0, 128], sizes = [2, 64], strides = [1, 1]} : vector<2x256xf32> to vector<2x64xf32>
    %342 = vector.extract_strided_slice %330 {offsets = [0, 192], sizes = [2, 64], strides = [1, 1]} : vector<2x256xf32> to vector<2x64xf32>
    %cst_110 = arith.constant 5.000000e-01 : f32
    %343 = vector.broadcast %cst_110 : f32 to vector<2x64xf32>
    %344 = arith.mulf %343, %342 : vector<2x64xf32>
    %cst_111 = arith.constant 5.000000e-01 : f32
    %345 = vector.broadcast %cst_111 : f32 to vector<2x64xf32>
    %346 = arith.addf %344, %345 : vector<2x64xf32>
    %347 = arith.mulf %340, %323 : vector<2x64xf32>
    %348 = arith.mulf %335, %341 : vector<2x64xf32>
    %349 = arith.addf %347, %348 : vector<2x64xf32>
    %350 = math.tanh %349 : vector<2x64xf32>
    %351 = arith.mulf %346, %350 : vector<2x64xf32>
    %352 = vector.extract_strided_slice %271 {offsets = [6, 0], sizes = [2, 256], strides = [1, 1]} : vector<16x256xf32> to vector<2x256xf32>
    %353 = arith.truncf %351 : vector<2x64xf32> to vector<2x64xbf16>
    %cst_112 = arith.constant dense<0.000000e+00> : vector<2x256xf32>
    %354 = tpu.matmul %353, %2, %cst_112 {dimension_numbers = #tpu.dot_dimension_numbers<[1], [0], [0], [1], [0, 0, 1, 1], [], []>} : vector<2x64xbf16>, vector<64x256xbf16>, vector<2x256xf32> -> vector<2x256xf32>
    %355 = arith.addf %352, %354 : vector<2x256xf32>
    %356 = math.tanh %355 : vector<2x256xf32>
    %357 = vector.extract_strided_slice %356 {offsets = [0, 0], sizes = [2, 64], strides = [1, 1]} : vector<2x256xf32> to vector<2x64xf32>
    %cst_113 = arith.constant 5.000000e-01 : f32
    %358 = vector.broadcast %cst_113 : f32 to vector<2x64xf32>
    %359 = arith.mulf %358, %357 : vector<2x64xf32>
    %cst_114 = arith.constant 5.000000e-01 : f32
    %360 = vector.broadcast %cst_114 : f32 to vector<2x64xf32>
    %361 = arith.addf %359, %360 : vector<2x64xf32>
    %362 = vector.extract_strided_slice %356 {offsets = [0, 64], sizes = [2, 64], strides = [1, 1]} : vector<2x256xf32> to vector<2x64xf32>
    %cst_115 = arith.constant 5.000000e-01 : f32
    %363 = vector.broadcast %cst_115 : f32 to vector<2x64xf32>
    %364 = arith.mulf %363, %362 : vector<2x64xf32>
    %cst_116 = arith.constant 5.000000e-01 : f32
    %365 = vector.broadcast %cst_116 : f32 to vector<2x64xf32>
    %366 = arith.addf %364, %365 : vector<2x64xf32>
    %367 = vector.extract_strided_slice %356 {offsets = [0, 128], sizes = [2, 64], strides = [1, 1]} : vector<2x256xf32> to vector<2x64xf32>
    %368 = vector.extract_strided_slice %356 {offsets = [0, 192], sizes = [2, 64], strides = [1, 1]} : vector<2x256xf32> to vector<2x64xf32>
    %cst_117 = arith.constant 5.000000e-01 : f32
    %369 = vector.broadcast %cst_117 : f32 to vector<2x64xf32>
    %370 = arith.mulf %369, %368 : vector<2x64xf32>
    %cst_118 = arith.constant 5.000000e-01 : f32
    %371 = vector.broadcast %cst_118 : f32 to vector<2x64xf32>
    %372 = arith.addf %370, %371 : vector<2x64xf32>
    %373 = arith.mulf %366, %349 : vector<2x64xf32>
    %374 = arith.mulf %361, %367 : vector<2x64xf32>
    %375 = arith.addf %373, %374 : vector<2x64xf32>
    %376 = math.tanh %375 : vector<2x64xf32>
    %377 = arith.mulf %372, %376 : vector<2x64xf32>
    %378 = vector.extract_strided_slice %271 {offsets = [8, 0], sizes = [2, 256], strides = [1, 1]} : vector<16x256xf32> to vector<2x256xf32>
    %379 = arith.truncf %377 : vector<2x64xf32> to vector<2x64xbf16>
    %cst_119 = arith.constant dense<0.000000e+00> : vector<2x256xf32>
    %380 = tpu.matmul %379, %2, %cst_119 {dimension_numbers = #tpu.dot_dimension_numbers<[1], [0], [0], [1], [0, 0, 1, 1], [], []>} : vector<2x64xbf16>, vector<64x256xbf16>, vector<2x256xf32> -> vector<2x256xf32>
    %381 = arith.addf %378, %380 : vector<2x256xf32>
    %382 = math.tanh %381 : vector<2x256xf32>
    %383 = vector.extract_strided_slice %382 {offsets = [0, 0], sizes = [2, 64], strides = [1, 1]} : vector<2x256xf32> to vector<2x64xf32>
    %cst_120 = arith.constant 5.000000e-01 : f32
    %384 = vector.broadcast %cst_120 : f32 to vector<2x64xf32>
    %385 = arith.mulf %384, %383 : vector<2x64xf32>
    %cst_121 = arith.constant 5.000000e-01 : f32
    %386 = vector.broadcast %cst_121 : f32 to vector<2x64xf32>
    %387 = arith.addf %385, %386 : vector<2x64xf32>
    %388 = vector.extract_strided_slice %382 {offsets = [0, 64], sizes = [2, 64], strides = [1, 1]} : vector<2x256xf32> to vector<2x64xf32>
    %cst_122 = arith.constant 5.000000e-01 : f32
    %389 = vector.broadcast %cst_122 : f32 to vector<2x64xf32>
    %390 = arith.mulf %389, %388 : vector<2x64xf32>
    %cst_123 = arith.constant 5.000000e-01 : f32
    %391 = vector.broadcast %cst_123 : f32 to vector<2x64xf32>
    %392 = arith.addf %390, %391 : vector<2x64xf32>
    %393 = vector.extract_strided_slice %382 {offsets = [0, 128], sizes = [2, 64], strides = [1, 1]} : vector<2x256xf32> to vector<2x64xf32>
    %394 = vector.extract_strided_slice %382 {offsets = [0, 192], sizes = [2, 64], strides = [1, 1]} : vector<2x256xf32> to vector<2x64xf32>
    %cst_124 = arith.constant 5.000000e-01 : f32
    %395 = vector.broadcast %cst_124 : f32 to vector<2x64xf32>
    %396 = arith.mulf %395, %394 : vector<2x64xf32>
    %cst_125 = arith.constant 5.000000e-01 : f32
    %397 = vector.broadcast %cst_125 : f32 to vector<2x64xf32>
    %398 = arith.addf %396, %397 : vector<2x64xf32>
    %399 = arith.mulf %392, %375 : vector<2x64xf32>
    %400 = arith.mulf %387, %393 : vector<2x64xf32>
    %401 = arith.addf %399, %400 : vector<2x64xf32>
    %402 = math.tanh %401 : vector<2x64xf32>
    %403 = arith.mulf %398, %402 : vector<2x64xf32>
    %404 = vector.extract_strided_slice %271 {offsets = [10, 0], sizes = [2, 256], strides = [1, 1]} : vector<16x256xf32> to vector<2x256xf32>
    %405 = arith.truncf %403 : vector<2x64xf32> to vector<2x64xbf16>
    %cst_126 = arith.constant dense<0.000000e+00> : vector<2x256xf32>
    %406 = tpu.matmul %405, %2, %cst_126 {dimension_numbers = #tpu.dot_dimension_numbers<[1], [0], [0], [1], [0, 0, 1, 1], [], []>} : vector<2x64xbf16>, vector<64x256xbf16>, vector<2x256xf32> -> vector<2x256xf32>
    %407 = arith.addf %404, %406 : vector<2x256xf32>
    %408 = math.tanh %407 : vector<2x256xf32>
    %409 = vector.extract_strided_slice %408 {offsets = [0, 0], sizes = [2, 64], strides = [1, 1]} : vector<2x256xf32> to vector<2x64xf32>
    %cst_127 = arith.constant 5.000000e-01 : f32
    %410 = vector.broadcast %cst_127 : f32 to vector<2x64xf32>
    %411 = arith.mulf %410, %409 : vector<2x64xf32>
    %cst_128 = arith.constant 5.000000e-01 : f32
    %412 = vector.broadcast %cst_128 : f32 to vector<2x64xf32>
    %413 = arith.addf %411, %412 : vector<2x64xf32>
    %414 = vector.extract_strided_slice %408 {offsets = [0, 64], sizes = [2, 64], strides = [1, 1]} : vector<2x256xf32> to vector<2x64xf32>
    %cst_129 = arith.constant 5.000000e-01 : f32
    %415 = vector.broadcast %cst_129 : f32 to vector<2x64xf32>
    %416 = arith.mulf %415, %414 : vector<2x64xf32>
    %cst_130 = arith.constant 5.000000e-01 : f32
    %417 = vector.broadcast %cst_130 : f32 to vector<2x64xf32>
    %418 = arith.addf %416, %417 : vector<2x64xf32>
    %419 = vector.extract_strided_slice %408 {offsets = [0, 128], sizes = [2, 64], strides = [1, 1]} : vector<2x256xf32> to vector<2x64xf32>
    %420 = vector.extract_strided_slice %408 {offsets = [0, 192], sizes = [2, 64], strides = [1, 1]} : vector<2x256xf32> to vector<2x64xf32>
    %cst_131 = arith.constant 5.000000e-01 : f32
    %421 = vector.broadcast %cst_131 : f32 to vector<2x64xf32>
    %422 = arith.mulf %421, %420 : vector<2x64xf32>
    %cst_132 = arith.constant 5.000000e-01 : f32
    %423 = vector.broadcast %cst_132 : f32 to vector<2x64xf32>
    %424 = arith.addf %422, %423 : vector<2x64xf32>
    %425 = arith.mulf %418, %401 : vector<2x64xf32>
    %426 = arith.mulf %413, %419 : vector<2x64xf32>
    %427 = arith.addf %425, %426 : vector<2x64xf32>
    %428 = math.tanh %427 : vector<2x64xf32>
    %429 = arith.mulf %424, %428 : vector<2x64xf32>
    %430 = vector.extract_strided_slice %271 {offsets = [12, 0], sizes = [2, 256], strides = [1, 1]} : vector<16x256xf32> to vector<2x256xf32>
    %431 = arith.truncf %429 : vector<2x64xf32> to vector<2x64xbf16>
    %cst_133 = arith.constant dense<0.000000e+00> : vector<2x256xf32>
    %432 = tpu.matmul %431, %2, %cst_133 {dimension_numbers = #tpu.dot_dimension_numbers<[1], [0], [0], [1], [0, 0, 1, 1], [], []>} : vector<2x64xbf16>, vector<64x256xbf16>, vector<2x256xf32> -> vector<2x256xf32>
    %433 = arith.addf %430, %432 : vector<2x256xf32>
    %434 = math.tanh %433 : vector<2x256xf32>
    %435 = vector.extract_strided_slice %434 {offsets = [0, 0], sizes = [2, 64], strides = [1, 1]} : vector<2x256xf32> to vector<2x64xf32>
    %cst_134 = arith.constant 5.000000e-01 : f32
    %436 = vector.broadcast %cst_134 : f32 to vector<2x64xf32>
    %437 = arith.mulf %436, %435 : vector<2x64xf32>
    %cst_135 = arith.constant 5.000000e-01 : f32
    %438 = vector.broadcast %cst_135 : f32 to vector<2x64xf32>
    %439 = arith.addf %437, %438 : vector<2x64xf32>
    %440 = vector.extract_strided_slice %434 {offsets = [0, 64], sizes = [2, 64], strides = [1, 1]} : vector<2x256xf32> to vector<2x64xf32>
    %cst_136 = arith.constant 5.000000e-01 : f32
    %441 = vector.broadcast %cst_136 : f32 to vector<2x64xf32>
    %442 = arith.mulf %441, %440 : vector<2x64xf32>
    %cst_137 = arith.constant 5.000000e-01 : f32
    %443 = vector.broadcast %cst_137 : f32 to vector<2x64xf32>
    %444 = arith.addf %442, %443 : vector<2x64xf32>
    %445 = vector.extract_strided_slice %434 {offsets = [0, 128], sizes = [2, 64], strides = [1, 1]} : vector<2x256xf32> to vector<2x64xf32>
    %446 = vector.extract_strided_slice %434 {offsets = [0, 192], sizes = [2, 64], strides = [1, 1]} : vector<2x256xf32> to vector<2x64xf32>
    %cst_138 = arith.constant 5.000000e-01 : f32
    %447 = vector.broadcast %cst_138 : f32 to vector<2x64xf32>
    %448 = arith.mulf %447, %446 : vector<2x64xf32>
    %cst_139 = arith.constant 5.000000e-01 : f32
    %449 = vector.broadcast %cst_139 : f32 to vector<2x64xf32>
    %450 = arith.addf %448, %449 : vector<2x64xf32>
    %451 = arith.mulf %444, %427 : vector<2x64xf32>
    %452 = arith.mulf %439, %445 : vector<2x64xf32>
    %453 = arith.addf %451, %452 : vector<2x64xf32>
    %454 = math.tanh %453 : vector<2x64xf32>
    %455 = arith.mulf %450, %454 : vector<2x64xf32>
    %456 = vector.extract_strided_slice %271 {offsets = [14, 0], sizes = [2, 256], strides = [1, 1]} : vector<16x256xf32> to vector<2x256xf32>
    %457 = arith.truncf %455 : vector<2x64xf32> to vector<2x64xbf16>
    %cst_140 = arith.constant dense<0.000000e+00> : vector<2x256xf32>
    %458 = tpu.matmul %457, %2, %cst_140 {dimension_numbers = #tpu.dot_dimension_numbers<[1], [0], [0], [1], [0, 0, 1, 1], [], []>} : vector<2x64xbf16>, vector<64x256xbf16>, vector<2x256xf32> -> vector<2x256xf32>
    %459 = arith.addf %456, %458 : vector<2x256xf32>
    %460 = math.tanh %459 : vector<2x256xf32>
    %461 = vector.extract_strided_slice %460 {offsets = [0, 0], sizes = [2, 64], strides = [1, 1]} : vector<2x256xf32> to vector<2x64xf32>
    %cst_141 = arith.constant 5.000000e-01 : f32
    %462 = vector.broadcast %cst_141 : f32 to vector<2x64xf32>
    %463 = arith.mulf %462, %461 : vector<2x64xf32>
    %cst_142 = arith.constant 5.000000e-01 : f32
    %464 = vector.broadcast %cst_142 : f32 to vector<2x64xf32>
    %465 = arith.addf %463, %464 : vector<2x64xf32>
    %466 = vector.extract_strided_slice %460 {offsets = [0, 64], sizes = [2, 64], strides = [1, 1]} : vector<2x256xf32> to vector<2x64xf32>
    %cst_143 = arith.constant 5.000000e-01 : f32
    %467 = vector.broadcast %cst_143 : f32 to vector<2x64xf32>
    %468 = arith.mulf %467, %466 : vector<2x64xf32>
    %cst_144 = arith.constant 5.000000e-01 : f32
    %469 = vector.broadcast %cst_144 : f32 to vector<2x64xf32>
    %470 = arith.addf %468, %469 : vector<2x64xf32>
    %471 = vector.extract_strided_slice %460 {offsets = [0, 128], sizes = [2, 64], strides = [1, 1]} : vector<2x256xf32> to vector<2x64xf32>
    %472 = vector.extract_strided_slice %460 {offsets = [0, 192], sizes = [2, 64], strides = [1, 1]} : vector<2x256xf32> to vector<2x64xf32>
    %cst_145 = arith.constant 5.000000e-01 : f32
    %473 = vector.broadcast %cst_145 : f32 to vector<2x64xf32>
    %474 = arith.mulf %473, %472 : vector<2x64xf32>
    %cst_146 = arith.constant 5.000000e-01 : f32
    %475 = vector.broadcast %cst_146 : f32 to vector<2x64xf32>
    %476 = arith.addf %474, %475 : vector<2x64xf32>
    %477 = arith.mulf %470, %453 : vector<2x64xf32>
    %478 = arith.mulf %465, %471 : vector<2x64xf32>
    %479 = arith.addf %477, %478 : vector<2x64xf32>
    %480 = math.tanh %479 : vector<2x64xf32>
    %481 = arith.mulf %476, %480 : vector<2x64xf32>
    %482 = tpu.concatenate %299, %325, %351, %377, %403, %429, %455, %481 in 0 : vector<2x64xf32>, vector<2x64xf32>, vector<2x64xf32>, vector<2x64xf32>, vector<2x64xf32>, vector<2x64xf32>, vector<2x64xf32>, vector<2x64xf32> -> vector<16x64xf32>
    %483 = arith.truncf %482 : vector<16x64xf32> to vector<16x64xbf16>
    %cst_147 = arith.constant dense<0.000000e+00> : vector<16x128xf32>
    %484 = tpu.matmul %483, %4, %cst_147 {dimension_numbers = #tpu.dot_dimension_numbers<[1], [0], [0], [1], [0, 0, 1, 1], [], []>} : vector<16x64xbf16>, vector<64x128xbf16>, vector<16x128xf32> -> vector<16x128xf32>
    %485 = vector.broadcast %8 : vector<1x128xf32> to vector<16x128xf32>
    %486 = arith.addf %484, %485 : vector<16x128xf32>
    %c0_148 = arith.constant 0 : index
    %c0_149 = arith.constant 0 : index
    %c0_150 = arith.constant 0 : index
    %487 = vector.load %arg5[%c0_148, %c0_149, %c0_150] : memref<1x16x128xf32, #tpu.memory_space<vmem>>, vector<1x16x128xf32>
    %488 = vector.shape_cast %487 : vector<1x16x128xf32> to vector<16x128xf32>
    %489 = vector.shape_cast %486 : vector<16x128xf32> to vector<1x16x128xf32>
    tpu.vector_store %arg5[%c0_148, %c0_149, %c0_150], %489 {strides = array<i32>} : memref<1x16x128xf32, #tpu.memory_space<vmem>>, vector<1x16x128xf32>,
    return
  }
  func.func @transform_0(%arg0: i32) -> (i32, i32, i32) {
    %c0_i32 = arith.constant 0 : i32
    %c0_i32_0 = arith.constant 0 : i32
    %c0_i32_1 = arith.constant 0 : i32
    return %arg0, %c0_i32, %c0_i32_0 : i32, i32, i32
  }
  func.func @transform_1(%arg0: i32) -> (i32, i32, i32) {
    %c0_i32 = arith.constant 0 : i32
    %c0_i32_0 = arith.constant 0 : i32
    %c0_i32_1 = arith.constant 0 : i32
    return %arg0, %c0_i32, %c0_i32_0 : i32, i32, i32
  }
  func.func @transform_2(%arg0: i32) -> (i32, i32) {
    %c0_i32 = arith.constant 0 : i32
    %c0_i32_0 = arith.constant 0 : i32
    %c0_i32_1 = arith.constant 0 : i32
    return %c0_i32, %c0_i32_0 : i32, i32
  }
  func.func @transform_3(%arg0: i32) -> (i32, i32) {
    %c0_i32 = arith.constant 0 : i32
    %c0_i32_0 = arith.constant 0 : i32
    %c0_i32_1 = arith.constant 0 : i32
    return %c0_i32, %c0_i32_0 : i32, i32
  }
  func.func @transform_4(%arg0: i32) -> (i32, i32, i32) {
    %c0_i32 = arith.constant 0 : i32
    %c0_i32_0 = arith.constant 0 : i32
    %c0_i32_1 = arith.constant 0 : i32
    return %arg0, %c0_i32, %c0_i32_0 : i32, i32, i32
  }
}

</mosaic_0001>

<bundles_post_ra>
// kernel: lstm_lm_vmf_forward.1
= control target key start
LH: loop header
LB: loop body
LE: loop exit
PB: predicated region body
PF: predicated region fallthrough
CT: control target
= control target key end

     0   :  { %9 = vsyncpa [#allocation3], 0  ;;  %s2383_s15 = smov [#allocation2]   ;;  %s2817_s0 = inlined_call_operand.vmem [shape: f32[1,16,128], index: 0, kind: input, shape index: {}]   ;;  %s2818_s1 = inlined_call_operand.vmem [shape: f32[1,16,128], index: 1, kind: input, shape index: {}]   ;;  %s2819_s2 = inlined_call_operand.vmem [shape: f32[160,256], index: 2, kind: input, shape index: {}]   ;;  %s2820_s3 = inlined_call_operand.hbm [shape: bf16[416,256], index: 3, kind: input, shape index: {}]   ;;  %s2821_s4 = inlined_call_operand.vmem [shape: f32[1,16,128], index: 4, kind: output, shape index: {}]  }
   0x1   :  { %s21_s16 = sshll.u32 %s2383_s15, 4  ;;  %s2359_s19 = scalar_lea.hbm %s2820_s3, 6656  ;;  %s22_s16 = int_to_ptr.vmem [resolvable:$true] %s21_s16 }
   0x2   :  { %p2360_p0 = scmp.ne.s32.totalorder %s2820_s3, %s2359_s19  ;;  %p2363_p1 = scmp.lt.u32.totalorder %s2359_s19, %s2820_s3 }
   0x4   :  { %p2365_p2 = pnand %p2363_p1, %p2360_p0 }
   0x6   :  { %2368 = shalt.err (!%p2365_p2)
}
   0x7   :  { %s2369_s24 = scalar_lea.vmem %s22_s16, 6656  ;;  %p2374_p4 = scmp.lt.s32.totalorder %s22_s16, %s22_s16 }
   0x8   :  { %p2370_p3 = scmp.ne.s32.totalorder %s22_s16, %s2369_s24  ;;  %p2375_p5 = scmp.lt.s32.totalorder %s2369_s24, %s2369_s24 }
   0xa   :  { %p2376_p6 = por %p2375_p5, %p2374_p4 }
   0xc   :  { %p2377_p7 = pnand %p2376_p6, %p2370_p3 }
   0xe   :  { %2380 = shalt.err (!%p2377_p7)
}
   0xf   :  { %s2384_s25 = smov 128   ;;  %s2385_s26 = smov 8  }
  0x10   :  { %27 = dma.hbm_to_vmem [thread:$0]  %s2820_s3, 6656, %s22_s16, [#allocation3], %s2384_s25, %s2384_s25, %s2385_s26  }
  0x11   :  { %2381 = dma.done.wait [#allocation3], 6656  }
  0x12   :  { %2382 = vsyncadd [#allocation3], 4294960640  ;;  %v2386_v0 = vmov 0   ;;  %v2387_v1 = vmov 0.0   ;;  %vm2388_vm0 = vmmov 0   ;;  %v107_v20 = vld [vmem:[%s2817_s0] sm:$0xff]  ;;  %v111_v23 = vlaneseq }
  0x13   :  { %233 = vmatprep.mubr.bf16.mxu0 %v2386_v0  ;;  %2075 = vmatprep.subr.bf16.mxu1 %v2387_v1  ;;  %v2207_v2 = vld [vmem:[#allocation2 + $0x4] ss:$8 sps:$4 sm:$0xff]   ;;  %v2209_v3 = vld [vmem:[#allocation2] ss:$8 sps:$4 sm:$0xff]   ;;  %v2210_v4 = vld [vmem:[#allocation2 + $0x14] ss:$8 sps:$4 sm:$0xff]  }
  0x14   :  { %2079 = vmatprep.mubr.msk.bf16.mxu1 %vm2388_vm0, %v2387_v1  ;;  %201 = vmatprep.subr.bf16.mxu0 %v2207_v2  ;;  %v2212_v5 = vld [vmem:[#allocation2 + $0x10] ss:$8 sps:$4 sm:$0xff]   ;;  %v2213_v6 = vld [vmem:[#allocation2 + $0x24] ss:$8 sps:$4 sm:$0xff]   ;;  %v2215_v7 = vld [vmem:[#allocation2 + $0x20] ss:$8 sps:$4 sm:$0xff]  }
  0x15   :  { %202 = vmatpush1.bf16.msra.mxu0 %v2209_v3  ;;  %v2216_v8 = vld [vmem:[#allocation2 + $0x34] ss:$8 sps:$4 sm:$0xff]   ;;  %v2218_v9 = vld [vmem:[#allocation2 + $0x30] ss:$8 sps:$4 sm:$0xff]   ;;  %v2219_v10 = vld [vmem:[#allocation2 + $0x44] ss:$8 sps:$4 sm:$0xff]  }
  0x16   :  { %203 = vmatprep.subr.bf16.mxu0 %v2210_v4  ;;  %v2434_v11 = vld [vmem:[#allocation2 + $0x140] ss:$8 sps:$4 sm:$0xff]   ;;  %v2222_v13 = vld [vmem:[#allocation2 + $0x54] ss:$8 sps:$4 sm:$0xff]   ;;  %v2436_v14 = vld [vmem:[#allocation2 + $0x150] ss:$8 sps:$4 sm:$0xff]  }
  0x17   :  { %v2221_v12 = vld [vmem:[#allocation2 + $0x40] ss:$8 sps:$4 sm:$0xff]   ;;  %2076 = vmatpush3.bf16.msra.mxu1 %v2434_v11  ;;  %v2224_v15 = vld [vmem:[#allocation2 + $0x50] ss:$8 sps:$4 sm:$0xff]   ;;  %v2225_v16 = vld [vmem:[#allocation2 + $0x64] ss:$8 sps:$4 sm:$0xff]  }
  0x18   :  { %2077 = vmatprep.subr.bf16.mxu1 %v2387_v1  ;;  %v2227_v17 = vld [vmem:[#allocation2 + $0x60] ss:$8 sps:$4 sm:$0xff]   ;;  %v2228_v18 = vld [vmem:[#allocation2 + $0x74] ss:$8 sps:$4 sm:$0xff]   ;;  %v2230_v19 = vld [vmem:[#allocation2 + $0x70] ss:$8 sps:$4 sm:$0xff]  }
  0x19   :  { %204 = vmatpush1.bf16.msra.mxu0 %v2212_v5  ;;  %v108_v21 = vld [vmem:[%s2817_s0 + $0x8] sm:$0xff]  ;;  %v2462_v24 = vshrl.u32 %v111_v23, 7  ;;  %s2389_s7 = smov 64   ;;  %s2390_s8 = smov 32   ;;  %vm255_vm1 = vcmask 261120   ;;  %vm865_vm2 = vcmask 523264  }
  0x1a   :  { %205 = vmatprep.subr.bf16.mxu0 %v2213_v6  ;;  %v109_v22 = vpack.c.bf16 %v108_v21, %v107_v20  ;;  %v2468_v26 = vld [vmem:[%s2819_s2] ss:$8 sm:$0x3]  ;;  %s2391_s9 = smov 96   ;;  %vm939_vm3 = vcmask 326656   ;;  %vm1014_vm4 = vcmask 123904  }
  0x1b   :  { %2078 = vmatpush3.bf16.msra.mxu1 %v2436_v14  ;;  %v113_v25 = vsub.s32 0, %v2462_v24  ;;  %vm1035_vm5 = vcmask 130048   ;;  %vm1124_vm6 = vcmask 1041408   ;;  %vm1127_vm7 = vcmask 1043456  }
  0x1c   :  { %2083 = vmatprep.subr.bf16.mxu1 %v2387_v1  ;;  %vm1130_vm8 = vcmask 1045504  }
  0x1d   :  { %206 = vmatpush1.bf16.msra.mxu0 %v2215_v7  ;;  %v114_v28 = vrot.slane %v2468_v26, %v113_v25 }
  0x1e   :  { %207 = vmatprep.subr.bf16.mxu0 %v2216_v8 }
  0x21   :  { %208 = vmatpush1.bf16.msra.mxu0 %v2218_v9 }
  0x22   :  { %209 = vmatprep.subr.bf16.mxu0 %v2219_v10 }
  0x25   :  { %210 = vmatpush1.bf16.msra.mxu0 %v2221_v12 }
  0x26   :  { %211 = vmatprep.subr.bf16.mxu0 %v2222_v13 }
  0x29   :  { %212 = vmatpush1.bf16.msra.mxu0 %v2224_v15 }
  0x2a   :  { %213 = vmatprep.subr.bf16.mxu0 %v2225_v16 }
  0x2d   :  { %214 = vmatpush1.bf16.msra.mxu0 %v2227_v17 }
  0x2e   :  { %215 = vmatprep.subr.bf16.mxu0 %v2228_v18 }
  0x31   :  { %216 = vmatpush1.bf16.msra.mxu0 %v2230_v19 }
  0x32   :  { %2067 = vmatprep.subr.bf16.mxu0 %v2387_v1 }
  0x34   :  { %234 = vmatmul.mubr.bf16.vlgmr.msra.gmra.mrb[0].mxu0 %v109_v22 }
  0x35   :  { %2068 = vmatpush3.bf16.msra.mxu0 %v2434_v11  ;;  %2071 = vmatprep.mubr.msk.bf16.mxu0 %vm2388_vm0, %v2387_v1 }
  0x36   :  { %2069 = vmatprep.subr.bf16.mxu0 %v2387_v1 }
  0x39   :  { %2070 = vmatpush3.bf16.msra.mxu0 %v2436_v14 }
  0x3a   :  { %2099 = vmatprep.subr.bf16.mxu0 %v2387_v1 }
  0x3c   :  { %2072 = vmatmul.mubr.bf16.vlgmr.msra.gmra.mrb[4].mxu0 %v2386_v0 }
  0x3d   :  { %2100 = vmatpush3.bf16.msra.mxu0 %v2434_v11  ;;  %2103 = vmatprep.mubr.msk.bf16.mxu0 %vm2388_vm0, %v2387_v1 }
  0x3e   :  { %2101 = vmatprep.subr.bf16.mxu0 %v2387_v1 }
  0x41   :  { %2102 = vmatpush3.bf16.msra.mxu0 %v2436_v14 }
  0x42   :  { %2115 = vmatprep.subr.bf16.mxu0 %v2387_v1 }
 0x107   :  { %v235_v27 = vpop.f32.mrb[0].mxu0 }
 0x108   :  { %v237_v29 = vpop.f32.mrb[1].mxu0  ;;  %v2477_v33 = vadd.f32 %v235_v27, %v114_v28 }
 0x109   :  { %v238_v30 = vpop.f32.mrb[2].mxu0 }
 0x10a   :  { %v2473_v31 = vadd.f32 %v238_v30, %v114_v28  ;;  %v2475_v32 = vpop.f32.mrb[3].mxu0 }
 0x10f   :  { %v293_v34 = vpop.f32.mrb[4].mxu0 }
 0x110   :  { %v299_v35 = vadd.f32 %v293_v34, %v2477_v33  ;;  %v2073_v36 = vpop.f32.mrb[5].mxu0 }
 0x111   :  { %v296_v37 = vpop.f32.mrb[6].mxu0 }
 0x112   :  { %2273 = vtanh.f32 %v299_v35  ;;  %v2074_v38 = vpop.f32.mrb[7].mxu0 }
 0x11c   :  { %v2274_v39 = vpop.eup %2273 }
 0x11d   :  { %305 = vrot.lane.b32.xlu0 %v2274_v39, %s2389_s7  ;;  %v301_v40 = vmul.f32 0.5, %v2274_v39 }
 0x11f   :  { %v302_v41 = vadd.f32 0.5, %v301_v40 }
 0x121   :  { %v303_v44 = vmul.f32 0.0, %v302_v41 }
 0x18f   :  { %v306_v42 = vpop.permute.xlu0 %305 }
 0x190   :  { %v308_v43 = vmul.f32 %v306_v42, %v302_v41 }
 0x192   :  { %310 = vrot.lane.b32.xlu0 %v308_v43, %s2390_s8 }
 0x204   :  { %v311_v45 = vpop.permute.xlu0 %310 }
 0x205   :  { %v313_v46 = vadd.f32 %v311_v45, %v303_v44 }
 0x207   :  { %2275 = vtanh.f32 %v313_v46  ;;  %v375_v63 = vrot.slane %v313_v46, 6 }
 0x211   :  { %v2276_v47 = vpop.eup %2275 }
 0x212   :  { %316 = vrot.lane.b32.xlu1 %v2276_v47, %s2389_s7 }
 0x284   :  { %v317_v48 = vpop.permute.xlu1 %316 }
 0x285   :  { %v319_v49 = vmul.f32 %v317_v48, %v302_v41 }
 0x287   :  { %v320_v50 = vpack.c.bf16 %v319_v49, %v319_v49 }
 0x289   :  { %322 = vrot.lane.b32.xlu1 %v320_v50, %s2390_s8 }
 0x2fb   :  { %v323_v51 = vpop.permute.xlu1 %322 }
 0x2fc   :  { %2080 = vmatmul.mubr.msk.bf16.vlgmr.msra.gmra.mrb[0].mxu1 %vm255_vm1, %v323_v51 }
 0x2fd   :  { %2084 = vmatpush3.bf16.msra.mxu1 %v2434_v11  ;;  %2087 = vmatprep.mubr.msk.bf16.mxu1 %vm2388_vm0, %v2387_v1 }
 0x2fe   :  { %2085 = vmatprep.subr.bf16.mxu1 %v2387_v1 }
 0x301   :  { %2086 = vmatpush3.bf16.msra.mxu1 %v2436_v14 }
 0x302   :  { %2091 = vmatprep.subr.bf16.mxu1 %v2387_v1 }
 0x3cf   :  { %v361_v52 = vpop.f32.mrb[0].mxu1 }
 0x3d0   :  { %v368_v53 = vrot.slane %v361_v52, 6  ;;  %v2081_v54 = vpop.f32.mrb[1].mxu1 }
 0x3d1   :  { %v364_v55 = vpop.f32.mrb[2].mxu1 }
 0x3d2   :  { %v370_v56 = vadd.f32 %v368_v53, %v2477_v33  ;;  %v2082_v57 = vpop.f32.mrb[3].mxu1 }
 0x3d4   :  { %2277 = vtanh.f32 %v370_v56 }
 0x3de   :  { %v2278_v58 = vpop.eup %2277 }
 0x3df   :  { %379 = vrot.lane.b32.xlu0 %v2278_v58, %s2389_s7  ;;  %v372_v59 = vmul.f32 0.5, %v2278_v58 }
 0x3e1   :  { %v373_v60 = vadd.f32 0.5, %v372_v59 }
 0x3e3   :  { %v377_v2 = vmul.f32 %v375_v63, %v373_v60 }
 0x451   :  { %v380_v61 = vpop.permute.xlu0 %379 }
 0x452   :  { %v382_v62 = vmul.f32 %v380_v61, %v373_v60 }
 0x454   :  { %384 = vrot.lane.b32.xlu1 %v382_v62, %s2390_s8 }
 0x4c6   :  { %v385_v3 = vpop.permute.xlu1 %384 }
 0x4c7   :  { %v387_v4 = vadd.f32 %v385_v3, %v377_v2 }
 0x4c9   :  { %2279 = vtanh.f32 %v387_v4  ;;  %v450_v27 = vrot.slane %v387_v4, 6 }
 0x4d3   :  { %v2280_v5 = vpop.eup %2279 }
 0x4d4   :  { %390 = vrot.lane.b32.xlu0 %v2280_v5, %s2389_s7 }
 0x546   :  { %v391_v6 = vpop.permute.xlu0 %390 }
 0x547   :  { %v393_v7 = vmul.f32 %v391_v6, %v373_v60 }
 0x549   :  { %v394_v8 = vpack.c.bf16 %v393_v7, %v393_v7 }
 0x54b   :  { %v396_v9 = vrot.slane %v394_v8, 1 }
 0x54d   :  { %397 = vrot.lane.b32.xlu1 %v396_v9, %s2390_s8 }
 0x5bf   :  { %v398_v10 = vpop.permute.xlu1 %397 }
 0x5c0   :  { %2088 = vmatmul.mubr.msk.bf16.vlgmr.msra.gmra.mrb[4].mxu1 %vm255_vm1, %v398_v10 }
 0x5c1   :  { %2092 = vmatpush3.bf16.msra.mxu1 %v2434_v11  ;;  %2095 = vmatprep.mubr.msk.bf16.mxu1 %vm2388_vm0, %v2387_v1 }
 0x5c2   :  { %2093 = vmatprep.subr.bf16.mxu1 %v2387_v1 }
 0x5c5   :  { %2094 = vmatpush3.bf16.msra.mxu1 %v2436_v14 }
 0x5c6   :  { %2107 = vmatprep.subr.bf16.mxu1 %v2387_v1 }
 0x693   :  { %v436_v12 = vpop.f32.mrb[4].mxu1 }
 0x694   :  { %v443_v13 = vrot.slane %v436_v12, 4  ;;  %v2089_v15 = vpop.f32.mrb[5].mxu1 }
 0x695   :  { %v439_v16 = vpop.f32.mrb[6].mxu1 }
 0x696   :  { %v445_v17 = vadd.f32 %v443_v13, %v2477_v33  ;;  %v2090_v18 = vpop.f32.mrb[7].mxu1 }
 0x698   :  { %2281 = vtanh.f32 %v445_v17 }
 0x6a2   :  { %v2282_v19 = vpop.eup %2281 }
 0x6a3   :  { %454 = vrot.lane.b32.xlu0 %v2282_v19, %s2389_s7  ;;  %v447_v20 = vmul.f32 0.5, %v2282_v19 }
 0x6a5   :  { %v448_v21 = vadd.f32 0.5, %v447_v20 }
 0x6a7   :  { %v452_v28 = vmul.f32 %v450_v27, %v448_v21 }
 0x715   :  { %v455_v22 = vpop.permute.xlu0 %454 }
 0x716   :  { %v457_v23 = vmul.f32 %v455_v22, %v448_v21 }
 0x718   :  { %459 = vrot.lane.b32.xlu1 %v457_v23, %s2390_s8 }
 0x78a   :  { %v460_v29 = vpop.permute.xlu1 %459 }
 0x78b   :  { %v462_v30 = vadd.f32 %v460_v29, %v452_v28 }
 0x78d   :  { %2283 = vtanh.f32 %v462_v30  ;;  %v525_v51 = vrot.slane %v462_v30, 6 }
 0x797   :  { %v2284_v34 = vpop.eup %2283 }
 0x798   :  { %465 = vrot.lane.b32.xlu0 %v2284_v34, %s2389_s7 }
 0x80a   :  { %v466_v35 = vpop.permute.xlu0 %465 }
 0x80b   :  { %v468_v36 = vmul.f32 %v466_v35, %v448_v21 }
 0x80d   :  { %v469_v37 = vpack.c.bf16 %v468_v36, %v468_v36 }
 0x80f   :  { %v471_v38 = vrot.slane %v469_v37, 2 }
 0x811   :  { %472 = vrot.lane.b32.xlu1 %v471_v38, %s2390_s8 }
 0x883   :  { %v473_v39 = vpop.permute.xlu1 %472 }
 0x884   :  { %2096 = vmatmul.mubr.msk.bf16.vlgmr.msra.gmra.mrb[8].mxu1 %vm255_vm1, %v473_v39 }
 0x885   :  { %2108 = vmatpush3.bf16.msra.mxu1 %v2434_v11  ;;  %2111 = vmatprep.mubr.msk.bf16.mxu1 %vm2388_vm0, %v2387_v1 }
 0x886   :  { %2109 = vmatprep.subr.bf16.mxu1 %v2387_v1 }
 0x889   :  { %2110 = vmatpush3.bf16.msra.mxu1 %v2436_v14 }
 0x88a   :  { %2123 = vmatprep.subr.bf16.mxu1 %v2387_v1 }
 0x957   :  { %v511_v40 = vpop.f32.mrb[8].mxu1 }
 0x958   :  { %v518_v41 = vrot.slane %v511_v40, 2  ;;  %v2097_v42 = vpop.f32.mrb[9].mxu1 }
 0x959   :  { %v514_v43 = vpop.f32.mrb[10].mxu1 }
 0x95a   :  { %v520_v44 = vadd.f32 %v518_v41, %v2477_v33  ;;  %v2098_v45 = vpop.f32.mrb[11].mxu1 }
 0x95c   :  { %2285 = vtanh.f32 %v520_v44 }
 0x966   :  { %v2286_v46 = vpop.eup %2285 }
 0x967   :  { %529 = vrot.lane.b32.xlu0 %v2286_v46, %s2389_s7  ;;  %v522_v47 = vmul.f32 0.5, %v2286_v46 }
 0x969   :  { %v523_v48 = vadd.f32 0.5, %v522_v47 }
 0x96b   :  { %v527_v52 = vmul.f32 %v525_v51, %v523_v48 }
 0x9d9   :  { %v530_v49 = vpop.permute.xlu0 %529 }
 0x9da   :  { %v532_v50 = vmul.f32 %v530_v49, %v523_v48 }
 0x9dc   :  { %534 = vrot.lane.b32.xlu1 %v532_v50, %s2390_s8 }
 0xa4e   :  { %v535_v53 = vpop.permute.xlu1 %534 }
 0xa4f   :  { %v537_v54 = vadd.f32 %v535_v53, %v527_v52 }
 0xa51   :  { %2287 = vtanh.f32 %v537_v54  ;;  %v597_v8 = vrot.slane %v537_v54, 6 }
 0xa5b   :  { %v2288_v55 = vpop.eup %2287 }
 0xa5c   :  { %540 = vrot.lane.b32.xlu0 %v2288_v55, %s2389_s7 }
 0xace   :  { %v541_v33 = vpop.permute.xlu0 %540 }
 0xacf   :  { %v543_v56 = vmul.f32 %v541_v33, %v523_v48 }
 0xad1   :  { %v544_v57 = vpack.c.bf16 %v543_v56, %v543_v56 }
 0xad3   :  { %v546_v58 = vrot.slane %v544_v57, 3 }
 0xad5   :  { %547 = vrot.lane.b32.xlu1 %v546_v58, %s2390_s8 }
 0xb47   :  { %v548_v59 = vpop.permute.xlu1 %547 }
 0xb48   :  { %2104 = vmatmul.mubr.msk.bf16.vlgmr.msra.gmra.mrb[8].mxu0 %vm255_vm1, %v548_v59 }
 0xb49   :  { %2116 = vmatpush3.bf16.msra.mxu0 %v2434_v11  ;;  %2119 = vmatprep.mubr.msk.bf16.mxu0 %vm2388_vm0, %v2387_v1 }
 0xb4a   :  { %2117 = vmatprep.subr.bf16.mxu0 %v2387_v1 }
 0xb4d   :  { %2118 = vmatpush3.bf16.msra.mxu0 %v2436_v14 }
 0xc1b   :  { %v586_v60 = vpop.f32.mrb[8].mxu0 }
 0xc1c   :  { %v592_v61 = vadd.f32 %v586_v60, %v2473_v31  ;;  %v2105_v62 = vpop.f32.mrb[9].mxu0 }
 0xc1d   :  { %v589_v63 = vpop.f32.mrb[10].mxu0 }
 0xc1e   :  { %2289 = vtanh.f32 %v592_v61  ;;  %v2106_v2 = vpop.f32.mrb[11].mxu0 }
 0xc1f   :  { %v117_v2 = vsub.s32 1, %v2462_v24 }
 0xc28   :  { %v2290_v3 = vpop.eup %2289 }
 0xc29   :  { %601 = vrot.lane.b32.xlu0 %v2290_v3, %s2389_s7  ;;  %v594_v4 = vmul.f32 0.5, %v2290_v3 }
 0xc2b   :  { %v595_v5 = vadd.f32 0.5, %v594_v4  ;;  %v118_v4 = vrot.slane %v2468_v26, %v117_v2 }
 0xc2d   :  { %v599_v9 = vmul.f32 %v597_v8, %v595_v5 }
 0xc9b   :  { %v602_v6 = vpop.permute.xlu0 %601 }
 0xc9c   :  { %v604_v7 = vmul.f32 %v602_v6, %v595_v5 }
 0xc9e   :  { %606 = vrot.lane.b32.xlu1 %v604_v7, %s2390_s8 }
 0xd10   :  { %v607_v10 = vpop.permute.xlu1 %606 }
 0xd11   :  { %v609_v12 = vadd.f32 %v607_v10, %v599_v9  ;;  %v241_v10 = vadd.f32 %v2475_v32, %v118_v4 }
 0xd13   :  { %2291 = vtanh.f32 %v609_v12  ;;  %v671_v35 = vrot.slane %v609_v12, 6 }
 0xd1d   :  { %v2292_v13 = vpop.eup %2291 }
 0xd1e   :  { %612 = vrot.lane.b32.xlu0 %v2292_v13, %s2389_s7 }
 0xd90   :  { %v613_v15 = vpop.permute.xlu0 %612 }
 0xd91   :  { %v615_v16 = vmul.f32 %v613_v15, %v595_v5 }
 0xd93   :  { %v616_v17 = vpack.c.bf16 %v615_v16, %v615_v16 }
 0xd95   :  { %618 = vrot.lane.b32.xlu1 %v616_v17, %s2390_s8 }
 0xe07   :  { %v619_v18 = vpop.permute.xlu1 %618 }
 0xe08   :  { %2112 = vmatmul.mubr.msk.bf16.vlgmr.msra.gmra.mrb[12].mxu1 %vm255_vm1, %v619_v18 }
 0xe09   :  { %2124 = vmatpush3.bf16.msra.mxu1 %v2434_v11  ;;  %2127 = vmatprep.mubr.msk.bf16.mxu1 %vm2388_vm0, %v2387_v1 }
 0xe0a   :  { %2125 = vmatprep.subr.bf16.mxu1 %v2387_v1 }
 0xe0d   :  { %2126 = vmatpush3.bf16.msra.mxu1 %v2436_v14 }
 0xedb   :  { %v657_v19 = vpop.f32.mrb[12].mxu1 }
 0xedc   :  { %v664_v20 = vrot.slane %v657_v19, 6  ;;  %v2113_v21 = vpop.f32.mrb[13].mxu1 }
 0xedd   :  { %v660_v22 = vpop.f32.mrb[14].mxu1 }
 0xede   :  { %v666_v23 = vadd.f32 %v664_v20, %v2473_v31  ;;  %v2114_v27 = vpop.f32.mrb[15].mxu1 }
 0xee0   :  { %2293 = vtanh.f32 %v666_v23 }
 0xeea   :  { %v2294_v28 = vpop.eup %2293 }
 0xeeb   :  { %675 = vrot.lane.b32.xlu0 %v2294_v28, %s2389_s7  ;;  %v668_v29 = vmul.f32 0.5, %v2294_v28  ;;  %v92_v28 = vld [vmem:[%s2819_s2 + $0x50] sm:$0xff] }
 0xeed   :  { %v669_v11 = vadd.f32 0.5, %v668_v29  ;;  %v93_v29 = vld [vmem:[%s2819_s2 + $0x60] sm:$0xff] }
 0xeef   :  { %v673_v36 = vmul.f32 %v671_v35, %v669_v11  ;;  %v95_v35 = vld [vmem:[%s2819_s2 + $0x80] sm:$0xff] }
 0xf5d   :  { %v676_v30 = vpop.permute.xlu0 %675 }
 0xf5e   :  { %v678_v34 = vmul.f32 %v676_v30, %v669_v11  ;;  %v2392_v30 = vmov 0.0|0.0  }
 0xf5f   :  { %2175 = vmatprep.subr.bf16.mxu0 %v2392_v30  ;;  %2187 = vmatprep.subr.bf16.mxu1 %v2392_v30 }
 0xf60   :  { %680 = vrot.lane.b32.xlu1 %v678_v34, %s2390_s8  ;;  %v2176_v34 = vpack.c.bf16 %v93_v29, %v92_v28  ;;  %v2238_v29 = vld [vmem:[#allocation2 + $0x94] ss:$8 sps:$4 sm:$0xff]  }
 0xfd2   :  { %v681_v14 = vpop.permute.xlu1 %680 }
 0xfd3   :  { %v683_v37 = vadd.f32 %v681_v14, %v673_v36  ;;  %v96_v14 = vld [vmem:[%s2819_s2 + $0x90] sm:$0xff] }
 0xfd5   :  { %2295 = vtanh.f32 %v683_v37  ;;  %v746_v55 = vrot.slane %v683_v37, 6  ;;  %v97_v37 = vld [vmem:[%s2819_s2 + $0xa0] sm:$0xff] }
 0xfdf   :  { %v2296_v38 = vpop.eup %2295 }
 0xfe0   :  { %686 = vrot.lane.b32.xlu0 %v2296_v38, %s2389_s7  ;;  %v2182_v38 = vpack.c.bf16 %v97_v37, %v96_v14  ;;  %v2247_v14 = vld [vmem:[#allocation2 + $0xc4] ss:$8 sps:$4 sm:$0xff]   ;;  %v2245_v37 = vld [vmem:[#allocation2 + $0xc0] ss:$8 sps:$4 sm:$0xff]  }
0x1052   :  { %v687_v39 = vpop.permute.xlu0 %686 }
0x1053   :  { %v689_v40 = vmul.f32 %v687_v39, %v669_v11  ;;  %v94_v11 = vld [vmem:[%s2819_s2 + $0x70] sm:$0xff] }
0x1054   :  { %v2179_v36 = vpack.c.bf16 %v95_v35, %v94_v11  ;;  %v2236_v11 = vld [vmem:[#allocation2 + $0x90] ss:$8 sps:$4 sm:$0xff]   ;;  %v2244_v35 = vld [vmem:[#allocation2 + $0xb4] ss:$8 sps:$4 sm:$0xff]  }
0x1055   :  { %v690_v41 = vpack.c.bf16 %v689_v40, %v689_v40 }
0x1057   :  { %v692_v42 = vrot.slane %v690_v41, 1 }
0x1059   :  { %693 = vrot.lane.b32.xlu1 %v692_v42, %s2390_s8  ;;  %v98_v42 = vld [vmem:[%s2819_s2 + $0xb0] sm:$0xff] }
0x10cb   :  { %v694_v43 = vpop.permute.xlu1 %693 }
0x10cc   :  { %2120 = vmatmul.mubr.msk.bf16.vlgmr.msra.gmra.mrb[12].mxu0 %vm255_vm1, %v694_v43  ;;  %v99_v43 = vld [vmem:[%s2819_s2 + $0xc0] sm:$0xff] }
0x10cd   :  { %2147 = vmatprep.mubr.msk.f32.mxu0 %vm2388_vm0, %v2387_v1  ;;  %2177 = vmatpush3.bf16.msra.mxu0 %v2176_v34  ;;  %v2239_v34 = vld [vmem:[#allocation2 + $0xa0] ss:$8 sps:$4 sm:$0xff]  }
0x10ce   :  { %2178 = vmatprep.subr.bf16.mxu0 %v2392_v30 }
0x10d1   :  { %2180 = vmatpush3.bf16.msra.mxu0 %v2179_v36  ;;  %v2242_v36 = vld [vmem:[#allocation2 + $0xb0] ss:$8 sps:$4 sm:$0xff]  }
0x10d2   :  { %2181 = vmatprep.subr.bf16.mxu0 %v2392_v30 }
0x10d5   :  { %2183 = vmatpush3.bf16.msra.mxu0 %v2182_v38  ;;  %v2253_v38 = vld [vmem:[#allocation2 + $0xd4] ss:$8 sps:$4 sm:$0xff]  }
0x10d6   :  { %2184 = vmatprep.subr.bf16.mxu0 %v2392_v30 }
0x119f   :  { %v732_v44 = vpop.f32.mrb[12].mxu0 }
0x11a0   :  { %v739_v45 = vrot.slane %v732_v44, 4  ;;  %v2121_v46 = vpop.f32.mrb[13].mxu0  ;;  %v2185_v44 = vpack.c.bf16 %v99_v43, %v98_v42  ;;  %v2265_v42 = vld [vmem:[#allocation2 + $0xf4] ss:$8 sps:$4 sm:$0xff]   ;;  %v2263_v43 = vld [vmem:[#allocation2 + $0xf0] ss:$8 sps:$4 sm:$0xff]  }
0x11a1   :  { %v735_v47 = vpop.f32.mrb[14].mxu0  ;;  %v102_v46 = vld [vmem:[%s2819_s2 + $0xf0] sm:$0xff] }
0x11a2   :  { %v741_v48 = vadd.f32 %v739_v45, %v2473_v31  ;;  %v2122_v49 = vpop.f32.mrb[15].mxu0  ;;  %2186 = vmatpush3.bf16.msra.mxu0 %v2185_v44  ;;  %v101_v45 = vld [vmem:[%s2819_s2 + $0xe0] sm:$0xff] }
0x11a3   :  { %v2188_v47 = vpack.c.bf16 %v102_v46, %v101_v45  ;;  %v1021_v44 = vld [vmem:[%s2818_s1] sm:$0xff]  ;;  %v1022_v45 = vld [vmem:[%s2818_s1 + $0x8] sm:$0xff] }
0x11a4   :  { %2297 = vtanh.f32 %v741_v48  ;;  %v1023_v46 = vpack.c.bf16 %v1022_v45, %v1021_v44 }
0x11ae   :  { %v2298_v50 = vpop.eup %2297 }
0x11af   :  { %750 = vrot.lane.b32.xlu0 %v2298_v50, %s2389_s7  ;;  %v743_v51 = vmul.f32 0.5, %v2298_v50 }
0x11b1   :  { %v744_v52 = vadd.f32 0.5, %v743_v51 }
0x11b3   :  { %v748_v33 = vmul.f32 %v746_v55, %v744_v52  ;;  %v104_v55 = vld [vmem:[%s2819_s2 + $0x110] sm:$0xff] }
0x1221   :  { %v751_v53 = vpop.permute.xlu0 %750 }
0x1222   :  { %v753_v54 = vmul.f32 %v751_v53, %v744_v52 }
0x1224   :  { %755 = vrot.lane.b32.xlu1 %v753_v54, %s2390_s8  ;;  %v103_v54 = vld [vmem:[%s2819_s2 + $0x100] sm:$0xff] }
0x1296   :  { %v756_v56 = vpop.permute.xlu1 %755 }
0x1297   :  { %v758_v57 = vadd.f32 %v756_v56, %v748_v33  ;;  %v2191_v33 = vpack.c.bf16 %v104_v55, %v103_v54  ;;  %v105_v56 = vld [vmem:[%s2819_s2 + $0x120] sm:$0xff] }
0x1299   :  { %2299 = vtanh.f32 %v758_v57  ;;  %v821_v21 = vrot.slane %v758_v57, 6  ;;  %v100_v57 = vld [vmem:[%s2819_s2 + $0xd0] ss:$0 sm:$0xff] }
0x12a3   :  { %v2300_v58 = vpop.eup %2299 }
0x12a4   :  { %761 = vrot.lane.b32.xlu0 %v2300_v58, %s2389_s7 }
0x1316   :  { %v762_v59 = vpop.permute.xlu0 %761 }
0x1317   :  { %v764_v60 = vmul.f32 %v762_v59, %v744_v52 }
0x1319   :  { %v765_v61 = vpack.c.bf16 %v764_v60, %v764_v60 }
0x131b   :  { %v767_v62 = vrot.slane %v765_v61, 2 }
0x131d   :  { %768 = vrot.lane.b32.xlu1 %v767_v62, %s2390_s8  ;;  %v106_v62 = vld [vmem:[%s2819_s2 + $0x130] ss:$0 sm:$0xff] }
0x138f   :  { %v769_v63 = vpop.permute.xlu1 %768 }
0x1390   :  { %2128 = vmatmul.mubr.msk.bf16.vlgmr.msra.gmra.mrb[16].mxu1 %vm255_vm1, %v769_v63 }
0x1391   :  { %2160 = vmatprep.mubr.msk.f32.mxu1 %vm2388_vm0, %v2387_v1  ;;  %2189 = vmatpush3.bf16.msra.mxu1 %v2188_v47 }
0x1392   :  { %2190 = vmatprep.subr.bf16.mxu1 %v2392_v30  ;;  %v2241_v30 = vld [vmem:[#allocation2 + $0xa4] ss:$8 sps:$4 sm:$0xff]  }
0x1395   :  { %2192 = vmatpush3.bf16.msra.mxu1 %v2191_v33 }
0x1396   :  { %2158 = vmatprep.subr.mxu1 %v2387_v1 }
0x1399   :  { %2159 = vmatpush3.msra.mxu1 %v105_v56 }
0x1463   :  { %v807_v3 = vpop.f32.mrb[16].mxu1 }
0x1464   :  { %v814_v5 = vrot.slane %v807_v3, 2  ;;  %v2129_v6 = vpop.f32.mrb[17].mxu1 }
0x1465   :  { %v810_v7 = vpop.f32.mrb[18].mxu1 }
0x1466   :  { %v816_v8 = vadd.f32 %v814_v5, %v2473_v31  ;;  %v2130_v9 = vpop.f32.mrb[19].mxu1  ;;  %v88_v7 = vld [vmem:[%s2819_s2 + $0x28] sm:$0xff] }
0x1467   :  { %v87_v9 = vld [vmem:[%s2819_s2 + $0x20] sm:$0xff] }
0x1468   :  { %2301 = vtanh.f32 %v816_v8  ;;  %v90_v8 = vld [vmem:[%s2819_s2 + $0x38] sm:$0xff] }
0x1469   :  { %2303 = vtanh.f32 %v241_v10  ;;  %v2193_v10 = vpack.c.bf16 %v90_v8, %v88_v7 }
0x146b   :  { %2194 = vmatprep.subr.bf16.mxu1 %v2193_v10 }
0x1472   :  { %v2302_v12 = vpop.eup %2301 }
0x1473   :  { %825 = vrot.lane.b32.xlu0 %v2302_v12, %s2389_s7  ;;  %v2304_v13 = vpop.eup %2303  ;;  %v818_v15 = vmul.f32 0.5, %v2302_v12  ;;  %v89_v12 = vld [vmem:[%s2819_s2 + $0x30] sm:$0xff] }
0x1474   :  { %v841_v17 = vmul.f32 0.5, %v2304_v13 }
0x1475   :  { %v819_v16 = vadd.f32 0.5, %v818_v15  ;;  %v2195_v15 = vpack.c.bf16 %v89_v12, %v87_v9 }
0x1476   :  { %v842_v19 = vadd.f32 0.5, %v841_v17  ;;  %v2629_v17 = vld [vmem:[#allocation2 + $0x100] ss:$8 sps:$4 sm:$0xff]  }
0x1477   :  { %844 = vrot.lane.b32.xlu0 %v2304_v13, %s2389_s7  ;;  %v823_v22 = vmul.f32 %v821_v21, %v819_v16  ;;  %v2235_v13 = vld [vmem:[#allocation2 + $0x84] ss:$8 sps:$4 sm:$0xff]  }
0x14e5   :  { %v826_v26 = vpop.permute.xlu0 %825 }
0x14e6   :  { %v828_v18 = vmul.f32 %v826_v26, %v819_v16  ;;  %v2633_v26 = vld [vmem:[#allocation2 + $0x114] ss:$8 sps:$4 sm:$0xff]  }
0x14e8   :  { %830 = vrot.lane.b32.xlu1 %v828_v18, %s2390_s8  ;;  %v2635_v18 = vld [vmem:[#allocation2 + $0x110] ss:$8 sps:$4 sm:$0xff]  }
0x14e9   :  { %v845_v31 = vpop.permute.xlu0 %844 }
0x14ea   :  { %v847_v20 = vmul.f32 %v845_v31, %v842_v19  ;;  %v2641_v31 = vld [vmem:[#allocation2 + $0x120] ss:$8 sps:$4 sm:$0xff]  }
0x14ec   :  { %2305 = vtanh.f32 %v847_v20  ;;  %v2645_v20 = vld [vmem:[#allocation2 + $0x134] ss:$8 sps:$4 sm:$0xff]  }
0x14f6   :  { %v2306_v32 = vpop.eup %2305 }
0x14f7   :  { %850 = vrot.lane.b32.xlu0 %v2306_v32, %s2391_s9  ;;  %v2647_v32 = vld [vmem:[#allocation2 + $0x130] ss:$8 sps:$4 sm:$0xff]  }
0x155a   :  { %v831_v23 = vpop.permute.xlu1 %830 }
0x155b   :  { %v833_v27 = vadd.f32 %v831_v23, %v823_v22 }
0x155d   :  { %2307 = vtanh.f32 %v833_v27  ;;  %v2233_v27 = vld [vmem:[#allocation2 + $0x80] ss:$8 sps:$4 sm:$0xff]  }
0x1567   :  { %v2308_v39 = vpop.eup %2307 }
0x1568   :  { %836 = vrot.lane.b32.xlu1 %v2308_v39, %s2389_s7  ;;  %v2251_v39 = vld [vmem:[#allocation2 + $0xd0] ss:$8 sps:$4 sm:$0xff]  }
0x1569   :  { %v851_v40 = vpop.permute.xlu0 %850 }
0x156a   :  { %v853_v41 = vmul.f32 %v851_v40, %v842_v19  ;;  %v2639_v19 = vld [vmem:[#allocation2 + $0x124] ss:$8 sps:$4 sm:$0xff]  }
0x156b   :  { %v2259_v40 = vld [vmem:[#allocation2 + $0xe4] ss:$8 sps:$4 sm:$0xff]  }
0x156c   :  { %859 = vrot.lane.b32.xlu0 %v853_v41, %s2389_s7  ;;  %v2257_v41 = vld [vmem:[#allocation2 + $0xe0] ss:$8 sps:$4 sm:$0xff]  }
0x15da   :  { %v837_v48 = vpop.permute.xlu1 %836 }
0x15db   :  { %v839_v49 = vmul.f32 %v837_v48, %v819_v16  ;;  %v2627_v16 = vld [vmem:[#allocation2 + $0x104] ss:$8 sps:$4 sm:$0xff]  }
0x15dc   :  { %1298 = vmatprep.subr.bf16.mxu0 %v2627_v16 }
0x15dd   :  { %855 = vrot.lane.b32.xlu1 %v839_v49, %s2390_s8 }
0x15de   :  { %v860_v50 = vpop.permute.xlu0 %859 }
0x164f   :  { %v856_v51 = vpop.permute.xlu1 %855 }
0x1650   :  { %v862_v52 = vsel %vm255_vm1, %v856_v51, %v860_v50 }
0x1651   :  { %v864_v53 = vrot.slane %v862_v52, 6 }
0x1653   :  { %2148 = vmatmul.mubr.msk.f32.vlgmr.msra.gmra.mrb[16].mxu0 %vm865_vm2, %v864_v53  ;;  %v1958_v53 = vld [vmem:[%s2819_s2 + $0x10] ss:$8 sm:$0x3] }
0x1654   :  { %1330 = vmatprep.mubr.bf16.mxu0 %v2386_v0  ;;  %1299 = vmatpush1.bf16.msra.mxu0 %v2629_v17  ;;  %v1028_v54 = vrot.slane %v1958_v53, %v113_v25  ;;  %v1032_v55 = vrot.slane %v1958_v53, %v117_v2 }
0x1655   :  { %1300 = vmatprep.subr.bf16.mxu0 %v2633_v26 }
0x1658   :  { %1301 = vmatpush1.bf16.msra.mxu0 %v2635_v18 }
0x1659   :  { %1302 = vmatprep.subr.bf16.mxu0 %v2639_v19 }
0x165c   :  { %1303 = vmatpush1.bf16.msra.mxu0 %v2641_v31 }
0x165d   :  { %1304 = vmatprep.subr.bf16.mxu0 %v2645_v20 }
0x1660   :  { %1305 = vmatpush1.bf16.msra.mxu0 %v2647_v32 }
0x1661   :  { %1363 = vmatprep.subr.bf16.mxu0 %v2627_v16 }
0x1663   :  { %1331 = vmatmul.mubr.bf16.vlgmr.msra.gmra.mrb[20].mxu0 %v2386_v0 }
0x1664   :  { %1364 = vmatpush1.bf16.msra.mxu0 %v2629_v17  ;;  %1395 = vmatprep.mubr.bf16.mxu0 %v2386_v0 }
0x1665   :  { %1365 = vmatprep.subr.bf16.mxu0 %v2633_v26 }
0x1668   :  { %1366 = vmatpush1.bf16.msra.mxu0 %v2635_v18 }
0x1669   :  { %1367 = vmatprep.subr.bf16.mxu0 %v2639_v19 }
0x166c   :  { %1368 = vmatpush1.bf16.msra.mxu0 %v2641_v31 }
0x166d   :  { %1369 = vmatprep.subr.bf16.mxu0 %v2645_v20 }
0x1670   :  { %1370 = vmatpush1.bf16.msra.mxu0 %v2647_v32 }
0x1671   :  { %1513 = vmatprep.subr.bf16.mxu0 %v2627_v16 }
0x1726   :  { %v934_v58 = vpop.f32.mrb[16].mxu0 }
0x1727   :  { %v935_v59 = vadd.f32 %v934_v58, %v100_v57  ;;  %v2149_v60 = vpop.f32.mrb[17].mxu0 }
0x1729   :  { %v938_v61 = vmax.f32 %v935_v59, 0.0 }
0x172b   :  { %2161 = vmatmul.mubr.msk.f32.vlgmr.msra.gmra.mrb[20].mxu1 %vm939_vm3, %v938_v61 }
0x172c   :  { %1103 = vmatprep.mubr.f32.mxu1 %v2387_v1  ;;  %2196 = vmatpush1.bf16.msra.mxu1 %v2195_v15 }
0x172d   :  { %1213 = vmatprep.subr.bf16.mxu1 %v2235_v13 }
0x1736   :  { %v1332_v47 = vpop.f32.mrb[20].mxu0 }
0x1737   :  { %v1334_v48 = vpop.f32.mrb[21].mxu0 }
0x1738   :  { %v1336_v49 = vpop.f32.mrb[22].mxu0 }
0x1739   :  { %v1337_v50 = vpop.f32.mrb[23].mxu0 }
0x17fe   :  { %v1009_v63 = vpop.f32.mrb[20].mxu1 }
0x17ff   :  { %v1010_v3 = vadd.f32 %v1009_v63, %v106_v62  ;;  %v2162_v4 = vpop.f32.mrb[21].mxu1 }
0x1801   :  { %v1013_v5 = vmul.f32 %v1010_v3, %v1010_v3 }
0x1803   :  { %v1015_v6 = vsel %vm1014_vm4, %v1013_v5, 0.0 }
0x1804   :  { %1016 = vadd.xlane.f32.xlu1 %v1015_v6 }
0x1891   :  { %v1017_v21 = vpop.xlane.xlu1 %1016 }
0x1892   :  { %v1018_v22 = vmax.f32 %v1017_v21, 1e-12 }
0x1894   :  { %2309 = vrsqrt.f32 %v1018_v22 }
0x189e   :  { %v2310_v23 = vpop.eup %2309 }
0x189f   :  { %v1020_v28 = vmul.f32 %v2310_v23, %v1010_v3 }
0x18a1   :  { %1986 = vmatmul.mubr.msk.f32.vlgmr.msra.gmra.mrb[22].mxu1 %vm1035_vm5, %v1020_v28 }
0x18a2   :  { %1214 = vmatpush1.bf16.msra.mxu1 %v2233_v27  ;;  %1245 = vmatprep.mubr.bf16.mxu1 %v2386_v0 }
0x18a3   :  { %1215 = vmatprep.subr.bf16.mxu1 %v2238_v29 }
0x18a6   :  { %1216 = vmatpush1.bf16.msra.mxu1 %v2236_v11 }
0x18a7   :  { %1217 = vmatprep.subr.bf16.mxu1 %v2241_v30 }
0x18aa   :  { %1218 = vmatpush1.bf16.msra.mxu1 %v2239_v34 }
0x18ab   :  { %1219 = vmatprep.subr.bf16.mxu1 %v2244_v35 }
0x18ae   :  { %1220 = vmatpush1.bf16.msra.mxu1 %v2242_v36 }
0x18af   :  { %1221 = vmatprep.subr.bf16.mxu1 %v2247_v14 }
0x18b2   :  { %1222 = vmatpush1.bf16.msra.mxu1 %v2245_v37 }
0x18b3   :  { %1223 = vmatprep.subr.bf16.mxu1 %v2253_v38 }
0x18b6   :  { %1224 = vmatpush1.bf16.msra.mxu1 %v2251_v39 }
0x18b7   :  { %1225 = vmatprep.subr.bf16.mxu1 %v2259_v40 }
0x18ba   :  { %1226 = vmatpush1.bf16.msra.mxu1 %v2257_v41 }
0x18bb   :  { %1227 = vmatprep.subr.bf16.mxu1 %v2265_v42 }
0x18be   :  { %1228 = vmatpush1.bf16.msra.mxu1 %v2263_v43 }
0x18bf   :  { %1438 = vmatprep.subr.bf16.mxu1 %v2627_v16 }
0x18c1   :  { %1246 = vmatmul.mubr.bf16.vlgmr.msra.gmra.mrb[24].mxu1 %v1023_v46 }
0x18c2   :  { %1439 = vmatpush1.bf16.msra.mxu1 %v2629_v17  ;;  %1470 = vmatprep.mubr.bf16.mxu1 %v2386_v0 }
0x18c3   :  { %1440 = vmatprep.subr.bf16.mxu1 %v2633_v26 }
0x18c6   :  { %1441 = vmatpush1.bf16.msra.mxu1 %v2635_v18 }
0x18c7   :  { %1442 = vmatprep.subr.bf16.mxu1 %v2639_v19 }
0x18ca   :  { %1443 = vmatpush1.bf16.msra.mxu1 %v2641_v31 }
0x18cb   :  { %1444 = vmatprep.subr.bf16.mxu1 %v2645_v20 }
0x18ce   :  { %1445 = vmatpush1.bf16.msra.mxu1 %v2647_v32 }
0x18cf   :  { %1588 = vmatprep.subr.bf16.mxu1 %v2627_v16 }
0x1974   :  { %v1105_v51 = vpop.f32.mrb[22].mxu1 }
0x1975   :  { %v1107_v52 = vpop.f32.mrb[23].mxu1  ;;  %v1106_v33 = vadd.f32 %v1105_v51, %v1028_v54 }
0x1976   :  { %v1108_v56 = vadd.f32 %v1107_v52, %v1032_v55 }
0x1977   :  { %v1112_v57 = vrot.slane %v1106_v33, 6  ;;  %v1116_v59 = vrot.slane %v1106_v33, 4  ;;  %v1120_v3 = vrot.slane %v1106_v33, 2 }
0x1978   :  { %v1113_v58 = vrot.slane %v1108_v56, 6  ;;  %v1117_v61 = vrot.slane %v1108_v56, 4  ;;  %v1121_v24 = vrot.slane %v1108_v56, 2 }
0x1979   :  { %v1125_v60 = vsel %vm1124_vm6, %v1106_v33, %v1112_v57 }
0x197a   :  { %v1126_v62 = vsel %vm1124_vm6, %v1108_v56, %v1113_v58  ;;  %v1128_v63 = vsel %vm1127_vm7, %v1125_v60, %v1116_v59 }
0x197b   :  { %v1129_v25 = vsel %vm1127_vm7, %v1126_v62, %v1117_v61  ;;  %v1131_v2 = vsel %vm1130_vm8, %v1128_v63, %v1120_v3 }
0x197c   :  { %v1132_v6 = vsel %vm1130_vm8, %v1129_v25, %v1121_v24 }
0x1994   :  { %v1247_v4 = vpop.f32.mrb[24].mxu1 }
0x1995   :  { %v2691_v5 = vadd.f32 %v1247_v4, %v1131_v2  ;;  %v1249_v7 = vpop.f32.mrb[25].mxu1 }
0x1996   :  { %v2694_v8 = vadd.f32 %v1249_v7, %v1132_v6  ;;  %v1251_v9 = vpop.f32.mrb[26].mxu1 }
0x1997   :  { %v1339_v10 = vadd.f32 %v1332_v47, %v2691_v5  ;;  %v2697_v12 = vadd.f32 %v1251_v9, %v1131_v2  ;;  %v1253_v13 = vpop.f32.mrb[27].mxu1 }
0x1998   :  { %v2699_v15 = vadd.f32 %v1253_v13, %v1132_v6  ;;  %v1340_v21 = vadd.f32 %v1334_v48, %v2694_v8 }
0x1999   :  { %2311 = vtanh.f32 %v1339_v10 }
0x199a   :  { %2313 = vtanh.f32 %v1340_v21 }
0x19a3   :  { %v2312_v22 = vpop.eup %2311 }
0x19a4   :  { %v1343_v23 = vmul.f32 0.5, %v2312_v22  ;;  %v2314_v28 = vpop.eup %2313 }
0x19a5   :  { %v1345_v35 = vmul.f32 0.5, %v2314_v28 }
0x19a6   :  { %v1344_v27 = vadd.f32 0.5, %v1343_v23 }
0x19a7   :  { %v1346_v36 = vadd.f32 0.5, %v1345_v35 }
0x19a8   :  { %v1348_v29 = vmul.f32 %v2314_v28, %v1344_v27  ;;  %v1347_v11 = vmul.f32 0.0, %v1344_v27 }
0x19aa   :  { %1350 = vrot.lane.b32.xlu0 %v1348_v29, %s2389_s7 }
0x1a1c   :  { %v1351_v30 = vpop.permute.xlu0 %1350 }
0x1a1d   :  { %v1353_v34 = vadd.f32 %v1351_v30, %v1347_v11 }
0x1a1f   :  { %2315 = vtanh.f32 %v1353_v34  ;;  %v1419_v50 = vrot.slane %v1353_v34, 6 }
0x1a29   :  { %v2316_v14 = vpop.eup %2315 }
0x1a2a   :  { %v2703_v37 = vmul.f32 %v2316_v14, %v1346_v36 }
0x1a2c   :  { %v1356_v38 = vpack.c.bf16 %v2703_v37, %v2703_v37 }
0x1a2e   :  { %1358 = vrot.lane.b32.xlu0 %v1356_v38, %s2389_s7 }
0x1aa0   :  { %v1359_v39 = vpop.permute.xlu0 %1358 }
0x1aa1   :  { %2011 = vmatmul.mubr.msk.bf16.vlgmr.msra.gmra.mrb[24].mxu0 %vm865_vm2, %v1359_v39 }
0x1aa2   :  { %1514 = vmatpush1.bf16.msra.mxu0 %v2629_v17  ;;  %1545 = vmatprep.mubr.bf16.mxu0 %v2386_v0 }
0x1aa3   :  { %1515 = vmatprep.subr.bf16.mxu0 %v2633_v26 }
0x1aa6   :  { %1516 = vmatpush1.bf16.msra.mxu0 %v2635_v18 }
0x1aa7   :  { %1517 = vmatprep.subr.bf16.mxu0 %v2639_v19 }
0x1aaa   :  { %1518 = vmatpush1.bf16.msra.mxu0 %v2641_v31 }
0x1aab   :  { %1519 = vmatprep.subr.bf16.mxu0 %v2645_v20 }
0x1aae   :  { %1520 = vmatpush1.bf16.msra.mxu0 %v2647_v32 }
0x1aaf   :  { %1656 = vmatprep.subr.bf16.mxu0 %v2627_v16 }
0x1b74   :  { %v1397_v40 = vpop.f32.mrb[24].mxu0 }
0x1b75   :  { %v1406_v41 = vrot.slane %v1397_v40, 6  ;;  %v1399_v42 = vpop.f32.mrb[25].mxu0 }
0x1b76   :  { %v1407_v43 = vrot.slane %v1399_v42, 6  ;;  %v1401_v44 = vpop.f32.mrb[26].mxu0 }
0x1b77   :  { %v1410_v45 = vadd.f32 %v1406_v41, %v2691_v5  ;;  %v1402_v46 = vpop.f32.mrb[27].mxu0 }
0x1b78   :  { %v1411_v47 = vadd.f32 %v1407_v43, %v2694_v8 }
0x1b79   :  { %2317 = vtanh.f32 %v1410_v45 }
0x1b7a   :  { %2319 = vtanh.f32 %v1411_v47 }
0x1b83   :  { %v2318_v48 = vpop.eup %2317 }
0x1b84   :  { %v1414_v49 = vmul.f32 0.5, %v2318_v48  ;;  %v2320_v52 = vpop.eup %2319 }
0x1b85   :  { %v1416_v56 = vmul.f32 0.5, %v2320_v52 }
0x1b86   :  { %v1415_v51 = vadd.f32 0.5, %v1414_v49 }
0x1b87   :  { %v1417_v57 = vadd.f32 0.5, %v1416_v56 }
0x1b88   :  { %v1422_v53 = vmul.f32 %v2320_v52, %v1415_v51  ;;  %v1421_v54 = vmul.f32 %v1419_v50, %v1415_v51 }
0x1b8a   :  { %1424 = vrot.lane.b32.xlu0 %v1422_v53, %s2389_s7 }
0x1bfc   :  { %v1425_v55 = vpop.permute.xlu0 %1424 }
0x1bfd   :  { %v1427_v33 = vadd.f32 %v1425_v55, %v1421_v54 }
0x1bff   :  { %2321 = vtanh.f32 %v1427_v33  ;;  %v1494_v13 = vrot.slane %v1427_v33, 6 }
0x1c09   :  { %v2322_v58 = vpop.eup %2321 }
0x1c0a   :  { %v1429_v59 = vmul.f32 %v2322_v58, %v1417_v57 }
0x1c0c   :  { %v1430_v60 = vpack.c.bf16 %v1429_v59, %v1429_v59  ;;  %v1873_v36 = vsel %vm1124_vm6, %v2703_v37, %v1429_v59 }
0x1c0e   :  { %v1432_v61 = vrot.slane %v1430_v60, 1 }
0x1c10   :  { %1433 = vrot.lane.b32.xlu0 %v1432_v61, %s2389_s7 }
0x1c82   :  { %v1434_v62 = vpop.permute.xlu0 %1433 }
0x1c83   :  { %2012 = vmatmul.mubr.msk.bf16.vlgmr.msra.gmra.mrb[28].mxu1 %vm865_vm2, %v1434_v62 }
0x1c84   :  { %1589 = vmatpush1.bf16.msra.mxu1 %v2629_v17  ;;  %1620 = vmatprep.mubr.bf16.mxu1 %v2386_v0 }
0x1c85   :  { %1590 = vmatprep.subr.bf16.mxu1 %v2633_v26 }
0x1c88   :  { %1591 = vmatpush1.bf16.msra.mxu1 %v2635_v18 }
0x1c89   :  { %1592 = vmatprep.subr.bf16.mxu1 %v2639_v19 }
0x1c8c   :  { %1593 = vmatpush1.bf16.msra.mxu1 %v2641_v31 }
0x1c8d   :  { %1594 = vmatprep.subr.bf16.mxu1 %v2645_v20 }
0x1c90   :  { %1595 = vmatpush1.bf16.msra.mxu1 %v2647_v32 }
0x1c91   :  { %1731 = vmatprep.subr.bf16.mxu1 %v2627_v16 }
0x1d56   :  { %v1472_v63 = vpop.f32.mrb[28].mxu1 }
0x1d57   :  { %v1481_v3 = vrot.slane %v1472_v63, 4  ;;  %v1474_v25 = vpop.f32.mrb[29].mxu1 }
0x1d58   :  { %v1482_v24 = vrot.slane %v1474_v25, 4  ;;  %v1476_v2 = vpop.f32.mrb[30].mxu1 }
0x1d59   :  { %v1485_v4 = vadd.f32 %v1481_v3, %v2691_v5  ;;  %v1477_v6 = vpop.f32.mrb[31].mxu1 }
0x1d5a   :  { %v1486_v7 = vadd.f32 %v1482_v24, %v2694_v8 }
0x1d5b   :  { %2323 = vtanh.f32 %v1485_v4 }
0x1d5c   :  { %2325 = vtanh.f32 %v1486_v7 }
0x1d65   :  { %v2324_v9 = vpop.eup %2323 }
0x1d66   :  { %v1489_v10 = vmul.f32 0.5, %v2324_v9  ;;  %v2326_v22 = vpop.eup %2325 }
0x1d67   :  { %v1491_v11 = vmul.f32 0.5, %v2326_v22 }
0x1d68   :  { %v1490_v21 = vadd.f32 0.5, %v1489_v10 }
0x1d69   :  { %v1492_v30 = vadd.f32 0.5, %v1491_v11 }
0x1d6a   :  { %v1497_v23 = vmul.f32 %v2326_v22, %v1490_v21  ;;  %v1496_v27 = vmul.f32 %v1494_v13, %v1490_v21 }
0x1d6c   :  { %1499 = vrot.lane.b32.xlu0 %v1497_v23, %s2389_s7 }
0x1dde   :  { %v1500_v28 = vpop.permute.xlu0 %1499 }
0x1ddf   :  { %v1502_v29 = vadd.f32 %v1500_v28, %v1496_v27 }
0x1de1   :  { %2327 = vtanh.f32 %v1502_v29  ;;  %v1569_v50 = vrot.slane %v1502_v29, 6 }
0x1deb   :  { %v2328_v34 = vpop.eup %2327 }
0x1dec   :  { %v1504_v35 = vmul.f32 %v2328_v34, %v1492_v30 }
0x1dee   :  { %v1505_v14 = vpack.c.bf16 %v1504_v35, %v1504_v35  ;;  %v1874_v38 = vsel %vm1127_vm7, %v1873_v36, %v1504_v35 }
0x1df0   :  { %v1507_v39 = vrot.slane %v1505_v14, 2 }
0x1df2   :  { %1508 = vrot.lane.b32.xlu0 %v1507_v39, %s2389_s7 }
0x1e64   :  { %v1509_v40 = vpop.permute.xlu0 %1508 }
0x1e65   :  { %2013 = vmatmul.mubr.msk.bf16.vlgmr.msra.gmra.mrb[28].mxu0 %vm865_vm2, %v1509_v40 }
0x1e66   :  { %1657 = vmatpush1.bf16.msra.mxu0 %v2629_v17  ;;  %1688 = vmatprep.mubr.bf16.mxu0 %v2386_v0 }
0x1e67   :  { %1658 = vmatprep.subr.bf16.mxu0 %v2633_v26 }
0x1e6a   :  { %1659 = vmatpush1.bf16.msra.mxu0 %v2635_v18 }
0x1e6b   :  { %1660 = vmatprep.subr.bf16.mxu0 %v2639_v19 }
0x1e6e   :  { %1661 = vmatpush1.bf16.msra.mxu0 %v2641_v31 }
0x1e6f   :  { %1662 = vmatprep.subr.bf16.mxu0 %v2645_v20 }
0x1e72   :  { %1663 = vmatpush1.bf16.msra.mxu0 %v2647_v32 }
0x1e73   :  { %1806 = vmatprep.subr.bf16.mxu0 %v2627_v16 }
0x1f38   :  { %v1547_v37 = vpop.f32.mrb[28].mxu0 }
0x1f39   :  { %v1556_v41 = vrot.slane %v1547_v37, 2  ;;  %v1549_v42 = vpop.f32.mrb[29].mxu0 }
0x1f3a   :  { %v1557_v43 = vrot.slane %v1549_v42, 2  ;;  %v1551_v44 = vpop.f32.mrb[30].mxu0 }
0x1f3b   :  { %v1560_v45 = vadd.f32 %v1556_v41, %v2691_v5  ;;  %v1552_v46 = vpop.f32.mrb[31].mxu0 }
0x1f3c   :  { %v1561_v47 = vadd.f32 %v1557_v43, %v2694_v8 }
0x1f3d   :  { %2329 = vtanh.f32 %v1560_v45 }
0x1f3e   :  { %2331 = vtanh.f32 %v1561_v47 }
0x1f47   :  { %v2330_v48 = vpop.eup %2329 }
0x1f48   :  { %v1564_v49 = vmul.f32 0.5, %v2330_v48  ;;  %v2332_v52 = vpop.eup %2331 }
0x1f49   :  { %v1566_v33 = vmul.f32 0.5, %v2332_v52 }
0x1f4a   :  { %v1565_v51 = vadd.f32 0.5, %v1564_v49 }
0x1f4b   :  { %v1567_v56 = vadd.f32 0.5, %v1566_v33 }
0x1f4c   :  { %v1572_v53 = vmul.f32 %v2332_v52, %v1565_v51  ;;  %v1571_v54 = vmul.f32 %v1569_v50, %v1565_v51 }
0x1f4e   :  { %1574 = vrot.lane.b32.xlu0 %v1572_v53, %s2389_s7 }
0x1fc0   :  { %v1575_v16 = vpop.permute.xlu0 %1574 }
0x1fc1   :  { %v1577_v55 = vadd.f32 %v1575_v16, %v1571_v54 }
0x1fc3   :  { %2333 = vtanh.f32 %v1577_v55  ;;  %v1638_v6 = vrot.slane %v1577_v55, 6 }
0x1fcd   :  { %v2334_v5 = vpop.eup %2333 }
0x1fce   :  { %v1579_v57 = vmul.f32 %v2334_v5, %v1567_v56 }
0x1fd0   :  { %v1580_v58 = vpack.c.bf16 %v1579_v57, %v1579_v57  ;;  %v2753_v8 = vsel %vm1130_vm8, %v1874_v38, %v1579_v57 }
0x1fd2   :  { %v1582_v59 = vrot.slane %v1580_v58, 3 }
0x1fd4   :  { %1583 = vrot.lane.b32.xlu0 %v1582_v59, %s2389_s7 }
0x2046   :  { %v1584_v60 = vpop.permute.xlu0 %1583 }
0x2047   :  { %2014 = vmatmul.mubr.msk.bf16.vlgmr.msra.gmra.mrb[32].mxu1 %vm865_vm2, %v1584_v60 }
0x2048   :  { %1732 = vmatpush1.bf16.msra.mxu1 %v2629_v17  ;;  %1763 = vmatprep.mubr.bf16.mxu1 %v2386_v0 }
0x2049   :  { %1733 = vmatprep.subr.bf16.mxu1 %v2633_v26 }
0x204c   :  { %1734 = vmatpush1.bf16.msra.mxu1 %v2635_v18 }
0x204d   :  { %1735 = vmatprep.subr.bf16.mxu1 %v2639_v19 }
0x2050   :  { %1736 = vmatpush1.bf16.msra.mxu1 %v2641_v31 }
0x2051   :  { %1737 = vmatprep.subr.bf16.mxu1 %v2645_v20 }
0x2054   :  { %1738 = vmatpush1.bf16.msra.mxu1 %v2647_v32 }
0x2055   :  { %2163 = vmatprep.subr.bf16.mxu1 %v2387_v1 }
0x211a   :  { %v1622_v61 = vpop.f32.mrb[32].mxu1 }
0x211b   :  { %v1629_v62 = vadd.f32 %v1622_v61, %v2697_v12  ;;  %v1624_v63 = vpop.f32.mrb[33].mxu1 }
0x211c   :  { %v1626_v3 = vpop.f32.mrb[34].mxu1  ;;  %v1630_v25 = vadd.f32 %v1624_v63, %v2699_v15 }
0x211d   :  { %2335 = vtanh.f32 %v1629_v62  ;;  %v1627_v24 = vpop.f32.mrb[35].mxu1 }
0x211e   :  { %2337 = vtanh.f32 %v1630_v25 }
0x2127   :  { %v2336_v2 = vpop.eup %2335 }
0x2128   :  { %v1633_v4 = vmul.f32 0.5, %v2336_v2  ;;  %v2338_v9 = vpop.eup %2337 }
0x2129   :  { %v1635_v23 = vmul.f32 0.5, %v2338_v9 }
0x212a   :  { %v1634_v7 = vadd.f32 0.5, %v1633_v4 }
0x212b   :  { %v1636_v27 = vadd.f32 0.5, %v1635_v23 }
0x212c   :  { %v1641_v10 = vmul.f32 %v2338_v9, %v1634_v7  ;;  %v1640_v13 = vmul.f32 %v1638_v6, %v1634_v7 }
0x212e   :  { %1643 = vrot.lane.b32.xlu0 %v1641_v10, %s2389_s7 }
0x21a0   :  { %v1644_v21 = vpop.permute.xlu0 %1643 }
0x21a1   :  { %v1646_v22 = vadd.f32 %v1644_v21, %v1640_v13 }
0x21a3   :  { %2339 = vtanh.f32 %v1646_v22  ;;  %v1712_v39 = vrot.slane %v1646_v22, 6 }
0x21ad   :  { %v2340_v28 = vpop.eup %2339 }
0x21ae   :  { %v2769_v29 = vmul.f32 %v2340_v28, %v1636_v27 }
0x21b0   :  { %v1649_v11 = vpack.c.bf16 %v2769_v29, %v2769_v29 }
0x21b2   :  { %1651 = vrot.lane.b32.xlu1 %v1649_v11, %s2389_s7 }
0x2224   :  { %v1652_v30 = vpop.permute.xlu1 %1651 }
0x2225   :  { %2015 = vmatmul.mubr.msk.bf16.vlgmr.msra.gmra.mrb[32].mxu0 %vm865_vm2, %v1652_v30 }
0x2226   :  { %1807 = vmatpush1.bf16.msra.mxu0 %v2629_v17  ;;  %1838 = vmatprep.mubr.bf16.mxu0 %v2386_v0 }
0x2227   :  { %1808 = vmatprep.subr.bf16.mxu0 %v2633_v26 }
0x222a   :  { %1809 = vmatpush1.bf16.msra.mxu0 %v2635_v18 }
0x222b   :  { %1810 = vmatprep.subr.bf16.mxu0 %v2639_v19 }
0x222e   :  { %1811 = vmatpush1.bf16.msra.mxu0 %v2641_v31 }
0x222f   :  { %1812 = vmatprep.subr.bf16.mxu0 %v2645_v20 }
0x2232   :  { %1813 = vmatpush1.bf16.msra.mxu0 %v2647_v32 }
0x22f8   :  { %v1690_v34 = vpop.f32.mrb[32].mxu0 }
0x22f9   :  { %v1699_v35 = vrot.slane %v1690_v34, 6  ;;  %v1692_v36 = vpop.f32.mrb[33].mxu0 }
0x22fa   :  { %v1700_v14 = vrot.slane %v1692_v36, 6  ;;  %v1694_v38 = vpop.f32.mrb[34].mxu0 }
0x22fb   :  { %v1703_v17 = vadd.f32 %v1699_v35, %v2697_v12  ;;  %v1695_v0 = vpop.f32.mrb[35].mxu0 }
0x22fc   :  { %v1704_v26 = vadd.f32 %v1700_v14, %v2699_v15  ;;  %v2270_v0 = vld [vmem:[#allocation2 + $0x170] ss:$8 sps:$4 sm:$0xff]  }
0x22fd   :  { %2341 = vtanh.f32 %v1703_v17  ;;  %v2269_v17 = vld [vmem:[#allocation2 + $0x160] ss:$8 sps:$4 sm:$0xff]  }
0x22fe   :  { %2343 = vtanh.f32 %v1704_v26 }
0x2307   :  { %v2342_v18 = vpop.eup %2341 }
0x2308   :  { %v1707_v19 = vmul.f32 0.5, %v2342_v18  ;;  %v2344_v40 = vpop.eup %2343 }
0x2309   :  { %v1709_v42 = vmul.f32 0.5, %v2344_v40 }
0x230a   :  { %v1708_v31 = vadd.f32 0.5, %v1707_v19 }
0x230b   :  { %v1710_v43 = vadd.f32 0.5, %v1709_v42 }
0x230c   :  { %v1715_v20 = vmul.f32 %v2344_v40, %v1708_v31  ;;  %v1714_v37 = vmul.f32 %v1712_v39, %v1708_v31 }
0x230e   :  { %1717 = vrot.lane.b32.xlu0 %v1715_v20, %s2389_s7 }
0x2380   :  { %v1718_v32 = vpop.permute.xlu0 %1717 }
0x2381   :  { %v1720_v41 = vadd.f32 %v1718_v32, %v1714_v37 }
0x2383   :  { %2345 = vtanh.f32 %v1720_v41  ;;  %v1787_v5 = vrot.slane %v1720_v41, 6 }
0x238d   :  { %v2346_v44 = vpop.eup %2345 }
0x238e   :  { %v1722_v45 = vmul.f32 %v2346_v44, %v1710_v43 }
0x2390   :  { %v1723_v46 = vpack.c.bf16 %v1722_v45, %v1722_v45  ;;  %v1876_v2 = vsel %vm1124_vm6, %v2769_v29, %v1722_v45 }
0x2392   :  { %v1725_v47 = vrot.slane %v1723_v46, 1 }
0x2394   :  { %1726 = vrot.lane.b32.xlu0 %v1725_v47, %s2389_s7 }
0x2406   :  { %v1727_v48 = vpop.permute.xlu0 %1726 }
0x2407   :  { %2016 = vmatmul.mubr.msk.bf16.vlgmr.msra.gmra.mrb[36].mxu1 %vm865_vm2, %v1727_v48 }
0x2408   :  { %2171 = vmatprep.mubr.msk.bf16.mxu1 %vm2388_vm0, %v2387_v1  ;;  %2164 = vmatpush3.bf16.msra.mxu1 %v2269_v17 }
0x2409   :  { %2165 = vmatprep.subr.bf16.mxu1 %v2387_v1 }
0x240c   :  { %2166 = vmatpush3.bf16.msra.mxu1 %v2270_v0 }
0x240d   :  { %2167 = vmatprep.subr.bf16.mxu1 %v2387_v1 }
0x24da   :  { %v1765_v49 = vpop.f32.mrb[36].mxu1 }
0x24db   :  { %v1774_v50 = vrot.slane %v1765_v49, 4  ;;  %v1767_v51 = vpop.f32.mrb[37].mxu1 }
0x24dc   :  { %v1775_v52 = vrot.slane %v1767_v51, 4  ;;  %v1769_v53 = vpop.f32.mrb[38].mxu1 }
0x24dd   :  { %v1778_v54 = vadd.f32 %v1774_v50, %v2697_v12  ;;  %v1770_v16 = vpop.f32.mrb[39].mxu1 }
0x24de   :  { %v1779_v55 = vadd.f32 %v1775_v52, %v2699_v15 }
0x24df   :  { %2347 = vtanh.f32 %v1778_v54 }
0x24e0   :  { %2349 = vtanh.f32 %v1779_v55 }
0x24e9   :  { %v2348_v33 = vpop.eup %2347 }
0x24ea   :  { %v1782_v56 = vmul.f32 0.5, %v2348_v33  ;;  %v2350_v58 = vpop.eup %2349 }
0x24eb   :  { %v1784_v63 = vmul.f32 0.5, %v2350_v58 }
0x24ec   :  { %v1783_v57 = vadd.f32 0.5, %v1782_v56 }
0x24ed   :  { %v1785_v3 = vadd.f32 0.5, %v1784_v63 }
0x24ee   :  { %v1790_v59 = vmul.f32 %v2350_v58, %v1783_v57  ;;  %v1789_v60 = vmul.f32 %v1787_v5, %v1783_v57 }
0x24f0   :  { %1792 = vrot.lane.b32.xlu0 %v1790_v59, %s2389_s7 }
0x2562   :  { %v1793_v61 = vpop.permute.xlu0 %1792 }
0x2563   :  { %v1795_v62 = vadd.f32 %v1793_v61, %v1789_v60 }
0x2565   :  { %2351 = vtanh.f32 %v1795_v62  ;;  %v1862_v34 = vrot.slane %v1795_v62, 6 }
0x256f   :  { %v2352_v25 = vpop.eup %2351 }
0x2570   :  { %v1797_v24 = vmul.f32 %v2352_v25, %v1785_v3 }
0x2572   :  { %v1798_v4 = vpack.c.bf16 %v1797_v24, %v1797_v24  ;;  %v1877_v6 = vsel %vm1127_vm7, %v1876_v2, %v1797_v24 }
0x2574   :  { %v1800_v7 = vrot.slane %v1798_v4, 2 }
0x2576   :  { %1801 = vrot.lane.b32.xlu0 %v1800_v7, %s2389_s7 }
0x25e8   :  { %v1802_v9 = vpop.permute.xlu0 %1801 }
0x25e9   :  { %2017 = vmatmul.mubr.msk.bf16.vlgmr.msra.gmra.mrb[36].mxu0 %vm865_vm2, %v1802_v9 }
0x26bc   :  { %v1840_v10 = vpop.f32.mrb[36].mxu0 }
0x26bd   :  { %v1849_v13 = vrot.slane %v1840_v10, 2  ;;  %v1842_v21 = vpop.f32.mrb[37].mxu0 }
0x26be   :  { %v1850_v22 = vrot.slane %v1842_v21, 2  ;;  %v1844_v23 = vpop.f32.mrb[38].mxu0 }
0x26bf   :  { %v1853_v27 = vadd.f32 %v1849_v13, %v2697_v12  ;;  %v1845_v28 = vpop.f32.mrb[39].mxu0  ;;  %v2271_v12 = vld [vmem:[#allocation2 + $0x180] ss:$8 sps:$4 sm:$0xff]  }
0x26c0   :  { %v1854_v29 = vadd.f32 %v1850_v22, %v2699_v15  ;;  %2168 = vmatpush3.bf16.msra.mxu1 %v2271_v12  ;;  %v2272_v15 = vld [vmem:[#allocation2 + $0x190] ss:$8 sps:$4 sm:$0xff]  }
0x26c1   :  { %2353 = vtanh.f32 %v1853_v27  ;;  %2169 = vmatprep.subr.bf16.mxu1 %v2387_v1  ;;  %v91_v1 = vld [vmem:[%s2819_s2 + $0x40] ss:$0 sm:$0xff] }
0x26c2   :  { %2355 = vtanh.f32 %v1854_v29 }
0x26c4   :  { %2170 = vmatpush3.bf16.msra.mxu1 %v2272_v15 }
0x26cb   :  { %v2354_v11 = vpop.eup %2353 }
0x26cc   :  { %v1857_v30 = vmul.f32 0.5, %v2354_v11  ;;  %v2356_v36 = vpop.eup %2355 }
0x26cd   :  { %v1859_v19 = vmul.f32 0.5, %v2356_v36 }
0x26ce   :  { %v1858_v35 = vadd.f32 0.5, %v1857_v30 }
0x26cf   :  { %v1860_v39 = vadd.f32 0.5, %v1859_v19 }
0x26d0   :  { %v1865_v14 = vmul.f32 %v2356_v36, %v1858_v35  ;;  %v1864_v38 = vmul.f32 %v1862_v34, %v1858_v35 }
0x26d2   :  { %1867 = vrot.lane.b32.xlu1 %v1865_v14, %s2389_s7 }
0x2744   :  { %v1868_v26 = vpop.permute.xlu1 %1867 }
0x2745   :  { %v1870_v18 = vadd.f32 %v1868_v26, %v1864_v38 }
0x2747   :  { %2357 = vtanh.f32 %v1870_v18 }
0x2751   :  { %v2358_v31 = vpop.eup %2357 }
0x2752   :  { %v1872_v40 = vmul.f32 %v2358_v31, %v1860_v39 }
0x2754   :  { %v1878_v20 = vsel %vm1130_vm8, %v1877_v6, %v1872_v40 }
0x2755   :  { %v1879_v37 = vpack.c.bf16 %v1878_v20, %v2753_v8 }
0x2757   :  { %1881 = vrot.lane.b32.xlu0 %v1879_v37, %s2389_s7 }
0x27c9   :  { %v1882_v32 = vpop.permute.xlu0 %1881 }
0x27ca   :  { %2172 = vmatmul.mubr.msk.bf16.vlgmr.msra.gmra.mrb[40].mxu1 %vm865_vm2, %v1882_v32 }
0x289d   :  { %v1944_v41 = vpop.f32.mrb[40].mxu1 }
0x289e   :  { %v1945_v42 = vadd.f32 %v1944_v41, %v91_v1  ;;  %v2173_v43 = vpop.f32.mrb[41].mxu1 }
0x289f   :  { %v1947_v44 = vpop.f32.mrb[42].mxu1 }
0x28a0   :  { %1951 = vst [vmem:[%s2821_s4] sm:$0xff] %v1945_v42  ;;  %v1948_v45 = vadd.f32 %v1947_v44, %v91_v1  ;;  %v2174_v46 = vpop.f32.mrb[43].mxu1 }
0x28a2   :  { %1952 = vst [vmem:[%s2821_s4 + $0x8] sm:$0xff] %v1948_v45 }
0x28a3   :  { %1957 = vsyncpa [#allocation3], 1 }

</bundles_post_ra>
